<compile_context>
chip_gen: v6e
topology: v6e:2x2x1
jax: 0.10.0
libtpu: 0.0.40
codegen_flags: <defaults>
</compile_context>

<pallas_src>
import functools

import jax
import jax.numpy as jnp
from jax.experimental import pallas as pl
from jax.experimental.pallas import tpu as pltpu

LANE = 128      # TPU lane width
SUBLANE = 8     # f32 sublane width
HIDDEN_DIM = 100


def _round_up(n, m):
    return ((n + m - 1) // m) * m


def _leaky_relu(x, slope=0.5):
    return jnp.where(x > 0, x, slope * x)


# ---------------------------------------------------------------------------
# Kernel
# ---------------------------------------------------------------------------
def encoder_mlp_kernel(x_ref, w1_ref, b1_ref, w2_ref, b2_ref, w3_ref, b3_ref,
                       o_ref):
    # x tile: (batch_tile, data_dim).  Weights/biases have constant index
    # maps, so they stay resident in VMEM across grid steps.
    dot = functools.partial(jnp.dot,
                            preferred_element_type=jnp.float32,
                            precision=jax.lax.Precision.HIGHEST)
    h1 = _leaky_relu(dot(x_ref[...], w1_ref[...]) + b1_ref[...])
    h2 = _leaky_relu(dot(h1, w2_ref[...]) + b2_ref[...])
    o_ref[...] = (dot(h2, w3_ref[...]) + b3_ref[...]).astype(o_ref.dtype)


# ---------------------------------------------------------------------------
# One-time parameter preparation (padding hoisted out of the forward)
# ---------------------------------------------------------------------------
def prepare_params(params):
    """Zero-pad the hidden (=100) dim to the 128-lane width, once at init.

    data_dim / latent_dim are left at their true widths: full-dim blocks are
    legal and avoid inflating the x read / output write streams.
    """
    hidden = params["w1"].shape[1]
    dh = _round_up(hidden, LANE) - hidden
    return {
        "w1": jnp.pad(params["w1"], ((0, 0), (0, dh))),
        "b1": jnp.pad(params["b1"], ((0, 0), (0, dh))),
        "w2": jnp.pad(params["w2"], ((0, dh), (0, dh))),
        "b2": jnp.pad(params["b2"], ((0, 0), (0, dh))),
        "w3": jnp.pad(params["w3"], ((0, dh), (0, 0))),
        "b3": params["b3"],
    }


# ---------------------------------------------------------------------------
# Forward wrapper
# ---------------------------------------------------------------------------
def _pick_batch_tile(b_pad, max_batch_tile):
    if b_pad > max_batch_tile:
        return max_batch_tile
    if b_pad >= 256:
        # v7x megacore: give the "parallel" batch axis >= 2 programs so it
        # can be sharded across the 2 TensorCores.
        return _round_up(-(-b_pad // 2), SUBLANE)
    # Tiny batch: single grid step, no per-step pipeline overhead.
    return b_pad


@functools.partial(jax.jit, static_argnames=("max_batch_tile",))
def encoder_forward(x, padded_params, *, max_batch_tile=1024):
    """x: (B, data_dim) float32.  padded_params: output of prepare_params."""
    B, data_dim = x.shape
    p = padded_params
    h_pad = p["w1"].shape[1]
    latent_dim = p["w3"].shape[1]

    # Pad the batch only to a sublane multiple; the grid handles the rest
    # via cdiv (tail-block rows are undefined but independent and sliced off).
    B_pad = _round_up(B, SUBLANE)
    x_pad = jnp.pad(x, ((0, B_pad - B), (0, 0))) if B_pad != B else x

    batch_tile = _pick_batch_tile(B_pad, max_batch_tile)
    grid = (pl.cdiv(B_pad, batch_tile),)

    # Weights/biases: full-array block with a constant index -> VMEM resident.
    rep = lambda shape: pl.BlockSpec(shape, lambda i: (0, 0))

    out = pl.pallas_call(
        encoder_mlp_kernel,
        out_shape=jax.ShapeDtypeStruct((B_pad, latent_dim), x.dtype),
        grid_spec=pl.GridSpec(
            grid=grid,
            in_specs=[
                pl.BlockSpec((batch_tile, data_dim), lambda i: (i, 0)),
                rep((data_dim, h_pad)),
                rep((1, h_pad)),
                rep((h_pad, h_pad)),
                rep((1, h_pad)),
                rep((h_pad, latent_dim)),
                rep((1, latent_dim)),
            ],
            out_specs=pl.BlockSpec((batch_tile, latent_dim), lambda i: (i, 0)),
        ),
        compiler_params=pltpu.CompilerParams(
            dimension_semantics=("parallel",)),
        # NOTE: for very large data_dim on v7x (32 MiB scoped / 64 MiB VMEM),
        # budget batch_tile against 2 * batch_tile * data_dim * 4 bytes and
        # set vmem_limit_bytes explicitly.
    )(x_pad, p["w1"], p["b1"], p["w2"], p["b2"], p["w3"], p["b3"])

    # Output already has the true latent width; only strip batch padding.
    # Under jit this slice fuses with the same XLA program (no extra dispatch).
    return out[:B] if B_pad != B else out


# ---------------------------------------------------------------------------
# Reference + deterministic parameter init
# ---------------------------------------------------------------------------
def init_encoder_params(key, data_dim, latent_dim, hidden_dim=HIDDEN_DIM):
    """Deterministic synthetic parameters (Kaiming-uniform-ish scaling)."""
    ks = jax.random.split(key, 6)

    def linear(kw, kb, fan_in, fan_out):
        bound = 1.0 / jnp.sqrt(fan_in)
        w = jax.random.uniform(kw, (fan_in, fan_out), jnp.float32,
                               -bound, bound)
        b = jax.random.uniform(kb, (1, fan_out), jnp.float32, -bound, bound)
        return w, b

    w1, b1 = linear(ks[0], ks[1], data_dim, hidden_dim)
    w2, b2 = linear(ks[2], ks[3], hidden_dim, hidden_dim)
    w3, b3 = linear(ks[4], ks[5], hidden_dim, latent_dim)
    return {"w1": w1, "b1": b1, "w2": w2, "b2": b2, "w3": w3, "b3": b3}


def encoder_reference(x, p):
    dot = functools.partial(jnp.dot, precision=jax.lax.Precision.HIGHEST)
    h1 = _leaky_relu(dot(x, p["w1"]) + p["b1"])
    h2 = _leaky_relu(dot(h1, p["w2"]) + p["b2"])
    return dot(h2, p["w3"]) + p["b3"]


if __name__ == "__main__":
    key = jax.random.PRNGKey(0)
    data_dim, latent_dim = 32, 16

    k_p, k1, k2, k3 = jax.random.split(key, 4)
    raw_params = init_encoder_params(k_p, data_dim, latent_dim)
    params = prepare_params(raw_params)   # pad once, reuse every call

    # B=37 : batch-sublane padding path (37 -> 40), single grid step.
    # B=64 : plain single-step path.
    # B=600: multi-step grid (tile 304, cdiv -> 2 programs, partial tail),
    #        exercises the megacore split + tail-block handling.
    for batch, kx in ((37, k1), (64, k2), (600, k3)):
        x = jax.random.normal(kx, (batch, data_dim), jnp.float32)
        out = jax.block_until_ready(encoder_forward(x, params))
        ref = encoder_reference(x, raw_params)
        assert out.shape == (batch, latent_dim), (out.shape, batch)
        assert jnp.allclose(out, ref, atol=1e-4, rtol=1e-4), \
            f"mismatch at B={batch}"

    print("KERNEL_OK")
</pallas_src>

<mosaic_0001>
module attributes {stable_mosaic.version = 11 : i64} {
  func.func @encoder_mlp_kernel(%arg0: i32, %arg1: memref<40x32xf32, #tpu.memory_space<vmem>>, %arg2: memref<32x128xf32, #tpu.memory_space<vmem>>, %arg3: memref<1x128xf32, #tpu.memory_space<vmem>>, %arg4: memref<128x128xf32, #tpu.memory_space<vmem>>, %arg5: memref<1x128xf32, #tpu.memory_space<vmem>>, %arg6: memref<128x16xf32, #tpu.memory_space<vmem>>, %arg7: memref<1x16xf32, #tpu.memory_space<vmem>>, %arg8: memref<40x16xf32, #tpu.memory_space<vmem>>) attributes {dimension_semantics = [#tpu.dimension_semantics<parallel>], iteration_bounds = array<i64: 1>, scalar_prefetch = 0 : i64, scratch_operands = 0 : i64, tpu.core_type = #tpu.core_type<tc>, window_params = [{transform_indices = @transform_0, window_bounds = array<i64: 40, 32>}, {pipeline_mode = #tpu.pipeline_mode<synchronous>, transform_indices = @transform_1, window_bounds = array<i64: 32, 128>}, {pipeline_mode = #tpu.pipeline_mode<synchronous>, transform_indices = @transform_2, window_bounds = array<i64: 1, 128>}, {pipeline_mode = #tpu.pipeline_mode<synchronous>, transform_indices = @transform_3, window_bounds = array<i64: 128, 128>}, {pipeline_mode = #tpu.pipeline_mode<synchronous>, transform_indices = @transform_4, window_bounds = array<i64: 1, 128>}, {pipeline_mode = #tpu.pipeline_mode<synchronous>, transform_indices = @transform_5, window_bounds = array<i64: 128, 16>}, {pipeline_mode = #tpu.pipeline_mode<synchronous>, transform_indices = @transform_6, window_bounds = array<i64: 1, 16>}, {transform_indices = @transform_7, window_bounds = array<i64: 40, 16>}]} {
    %c0 = arith.constant 0 : index
    %c0_0 = arith.constant 0 : index
    %0 = vector.load %arg1[%c0, %c0_0] : memref<40x32xf32, #tpu.memory_space<vmem>>, vector<40x32xf32>
    %c0_1 = arith.constant 0 : index
    %c0_2 = arith.constant 0 : index
    %1 = vector.load %arg2[%c0_1, %c0_2] : memref<32x128xf32, #tpu.memory_space<vmem>>, vector<32x128xf32>
    %cst = arith.constant dense<0.000000e+00> : vector<40x128xf32>
    %2 = tpu.matmul %0, %1, %cst {dimension_numbers = #tpu.dot_dimension_numbers<[1], [0], [0], [1], [0, 0, 1, 1], [], []>, precision = #tpu.contract_precision<fp32>} : vector<40x32xf32>, vector<32x128xf32>, vector<40x128xf32> -> vector<40x128xf32>
    %c0_3 = arith.constant 0 : index
    %c0_4 = arith.constant 0 : index
    %3 = vector.load %arg3[%c0_3, %c0_4] : memref<1x128xf32, #tpu.memory_space<vmem>>, vector<1x128xf32>
    %4 = vector.broadcast %3 : vector<1x128xf32> to vector<40x128xf32>
    %5 = arith.addf %2, %4 : vector<40x128xf32>
    %cst_5 = arith.constant 0.000000e+00 : f32
    %6 = vector.broadcast %cst_5 : f32 to vector<40x128xf32>
    %7 = arith.cmpf ogt, %5, %6 : vector<40x128xf32>
    %cst_6 = arith.constant 5.000000e-01 : f32
    %8 = vector.broadcast %cst_6 : f32 to vector<40x128xf32>
    %9 = arith.mulf %8, %5 : vector<40x128xf32>
    %10 = arith.select %7, %5, %9 : vector<40x128xi1>, vector<40x128xf32>
    %c0_7 = arith.constant 0 : index
    %c0_8 = arith.constant 0 : index
    %11 = vector.load %arg4[%c0_7, %c0_8] : memref<128x128xf32, #tpu.memory_space<vmem>>, vector<128x128xf32>
    %cst_9 = arith.constant dense<0.000000e+00> : vector<40x128xf32>
    %12 = tpu.matmul %10, %11, %cst_9 {dimension_numbers = #tpu.dot_dimension_numbers<[1], [0], [0], [1], [0, 0, 1, 1], [], []>, precision = #tpu.contract_precision<fp32>} : vector<40x128xf32>, vector<128x128xf32>, vector<40x128xf32> -> vector<40x128xf32>
    %c0_10 = arith.constant 0 : index
    %c0_11 = arith.constant 0 : index
    %13 = vector.load %arg5[%c0_10, %c0_11] : memref<1x128xf32, #tpu.memory_space<vmem>>, vector<1x128xf32>
    %14 = vector.broadcast %13 : vector<1x128xf32> to vector<40x128xf32>
    %15 = arith.addf %12, %14 : vector<40x128xf32>
    %cst_12 = arith.constant 0.000000e+00 : f32
    %16 = vector.broadcast %cst_12 : f32 to vector<40x128xf32>
    %17 = arith.cmpf ogt, %15, %16 : vector<40x128xf32>
    %cst_13 = arith.constant 5.000000e-01 : f32
    %18 = vector.broadcast %cst_13 : f32 to vector<40x128xf32>
    %19 = arith.mulf %18, %15 : vector<40x128xf32>
    %20 = arith.select %17, %15, %19 : vector<40x128xi1>, vector<40x128xf32>
    %c0_14 = arith.constant 0 : index
    %c0_15 = arith.constant 0 : index
    %21 = vector.load %arg6[%c0_14, %c0_15] : memref<128x16xf32, #tpu.memory_space<vmem>>, vector<128x16xf32>
    %cst_16 = arith.constant dense<0.000000e+00> : vector<40x16xf32>
    %22 = tpu.matmul %20, %21, %cst_16 {dimension_numbers = #tpu.dot_dimension_numbers<[1], [0], [0], [1], [0, 0, 1, 1], [], []>, precision = #tpu.contract_precision<fp32>} : vector<40x128xf32>, vector<128x16xf32>, vector<40x16xf32> -> vector<40x16xf32>
    %c0_17 = arith.constant 0 : index
    %c0_18 = arith.constant 0 : index
    %23 = vector.load %arg7[%c0_17, %c0_18] : memref<1x16xf32, #tpu.memory_space<vmem>>, vector<1x16xf32>
    %24 = vector.broadcast %23 : vector<1x16xf32> to vector<40x16xf32>
    %25 = arith.addf %22, %24 : vector<40x16xf32>
    %c0_19 = arith.constant 0 : index
    %c0_20 = arith.constant 0 : index
    %26 = vector.load %arg8[%c0_19, %c0_20] : memref<40x16xf32, #tpu.memory_space<vmem>>, vector<40x16xf32>
    tpu.vector_store %arg8[%c0_19, %c0_20], %25 {strides = array<i32>} : memref<40x16xf32, #tpu.memory_space<vmem>>, vector<40x16xf32>,
    return
  }
  func.func @transform_0(%arg0: i32) -> (i32, i32) {
    %c0_i32 = arith.constant 0 : i32
    %c0_i32_0 = arith.constant 0 : i32
    return %arg0, %c0_i32 : i32, i32
  }
  func.func @transform_1(%arg0: i32) -> (i32, i32) {
    %c0_i32 = arith.constant 0 : i32
    %c0_i32_0 = arith.constant 0 : i32
    %c0_i32_1 = arith.constant 0 : i32
    return %c0_i32, %c0_i32_0 : i32, i32
  }
  func.func @transform_2(%arg0: i32) -> (i32, i32) {
    %c0_i32 = arith.constant 0 : i32
    %c0_i32_0 = arith.constant 0 : i32
    %c0_i32_1 = arith.constant 0 : i32
    return %c0_i32, %c0_i32_0 : i32, i32
  }
  func.func @transform_3(%arg0: i32) -> (i32, i32) {
    %c0_i32 = arith.constant 0 : i32
    %c0_i32_0 = arith.constant 0 : i32
    %c0_i32_1 = arith.constant 0 : i32
    return %c0_i32, %c0_i32_0 : i32, i32
  }
  func.func @transform_4(%arg0: i32) -> (i32, i32) {
    %c0_i32 = arith.constant 0 : i32
    %c0_i32_0 = arith.constant 0 : i32
    %c0_i32_1 = arith.constant 0 : i32
    return %c0_i32, %c0_i32_0 : i32, i32
  }
  func.func @transform_5(%arg0: i32) -> (i32, i32) {
    %c0_i32 = arith.constant 0 : i32
    %c0_i32_0 = arith.constant 0 : i32
    %c0_i32_1 = arith.constant 0 : i32
    return %c0_i32, %c0_i32_0 : i32, i32
  }
  func.func @transform_6(%arg0: i32) -> (i32, i32) {
    %c0_i32 = arith.constant 0 : i32
    %c0_i32_0 = arith.constant 0 : i32
    %c0_i32_1 = arith.constant 0 : i32
    return %c0_i32, %c0_i32_0 : i32, i32
  }
  func.func @transform_7(%arg0: i32) -> (i32, i32) {
    %c0_i32 = arith.constant 0 : i32
    %c0_i32_0 = arith.constant 0 : i32
    return %arg0, %c0_i32 : i32, i32
  }
}

</mosaic_0001>

<bundles_post_ra>
// kernel: encoder_forward.1
= control target key start
LH: loop header
LB: loop body
LE: loop exit
PB: predicated region body
PF: predicated region fallthrough
CT: control target
= control target key end

     0   :  { %vm42_vm0 = vcmask 261120   ;;  %v4827_v0 = vmov 0.0   ;;  %vm3441_vm1 = vmmov 0   ;;  %vm2417_vm12 = vcmask 130048   ;;  %s4803_s1 = inlined_call_operand.vmem [shape: f32[32,128], index: 1, kind: input, shape index: {}]   ;;  %s4804_s0 = inlined_call_operand.vmem [shape: f32[40,32], index: 0, kind: input, shape index: {}]   ;;  %s4805_s3 = inlined_call_operand.vmem [shape: f32[128,128], index: 3, kind: input, shape index: {}]   ;;  %s4806_s2 = inlined_call_operand.vmem [shape: f32[1,128], index: 2, kind: input, shape index: {}]   ;;  %s4807_s5 = inlined_call_operand.vmem [shape: f32[128,16], index: 5, kind: input, shape index: {}]   ;;  %s4808_s4 = inlined_call_operand.vmem [shape: f32[1,128], index: 4, kind: input, shape index: {}]   ;;  %s4809_s6 = inlined_call_operand.vmem [shape: f32[1,16], index: 6, kind: input, shape index: {}]   ;;  %s4810_s7 = inlined_call_operand.vmem [shape: f32[40,16], index: 7, kind: output, shape index: {}]  }
   0x1   :  { %2736 = vmatprep.subr.mxu0 %v4827_v0  ;;  %v34_v1 = vld [vmem:[%s4803_s1 + $0x18] sm:$0xff]  ;;  %v33_v2 = vld [vmem:[%s4803_s1 + $0x10] sm:$0xff]  ;;  %v32_v3 = vld [vmem:[%s4803_s1 + $0x8] sm:$0xff]  ;;  %2759 = vmatprep.subr.mxu1 %v4827_v0 }
   0x2   :  { %v3493_v4 = vand.u32 4294901760, %v34_v1  ;;  %v3495_v5 = vand.u32 4294901760, %v33_v2  ;;  %v3497_v6 = vand.u32 4294901760, %v32_v3  ;;  %v31_v7 = vld [vmem:[%s4803_s1] sm:$0xff]  ;;  %2744 = vmatprep.mubr.msk.f32.mxu0 %vm3441_vm1, %v4827_v0  ;;  %v27_v9 = vld [vmem:[%s4804_s0 + $0x8] sm:$0xff]  ;;  %2767 = vmatprep.mubr.msk.f32.mxu1 %vm3441_vm1, %v4827_v0  ;;  %v28_v13 = vld [vmem:[%s4804_s0 + $0x10] sm:$0xff] }
   0x3   :  { %v26_v8 = vld [vmem:[%s4804_s0] sm:$0xff]  ;;  %v3512_v10 = vand.u32 4294901760, %v31_v7  ;;  %v47_v12 = vsel %vm42_vm0, %v27_v9, 0  ;;  %v29_v14 = vld [vmem:[%s4804_s0 + $0x18] sm:$0xff]  ;;  %v50_v21 = vsel %vm42_vm0, %v28_v13, 0  ;;  %v744_v62 = vld [vmem:[%s4805_s3 + $0x70] sm:$0xff] }
   0x4   :  { %v44_v11 = vsel %vm42_vm0, %v26_v8, 0  ;;  %2737 = vmatpush3.msra.mxu0 %v3493_v4  ;;  %v3524_v15 = vsub.f32 %v34_v1, %v3493_v4  ;;  %v3529_v17 = vsub.f32 %v33_v2, %v3495_v5  ;;  %v3532_v18 = vsub.f32 %v32_v3, %v3497_v6  ;;  %v30_v38 = vld [vmem:[%s4804_s0 + $0x20] sm:$0xff]  ;;  %v745_v60 = vld [vmem:[%s4805_s3 + $0x78] sm:$0xff]  ;;  %v743_v2 = vld [vmem:[%s4805_s3 + $0x68] sm:$0xff] }
   0x5   :  { %v3526_v16 = vand.u32 4294901760, %v44_v11  ;;  %2738 = vmatprep.subr.mxu0 %v4827_v0  ;;  %v3535_v19 = vand.u32 4294901760, %v47_v12  ;;  %v3538_v20 = vsub.f32 %v31_v7, %v3512_v10  ;;  %v53_v22 = vsel %vm42_vm0, %v29_v14, 0 }
   0x6   :  { %2739 = vmatpush3.msra.mxu0 %v3495_v5  ;;  %v204_v23 = vand.u32 4294901760, %v3524_v15  ;;  %v211_v25 = vand.u32 4294901760, %v3529_v17  ;;  %v218_v26 = vand.u32 4294901760, %v3532_v18  ;;  %v3554_v29 = vand.u32 4294901760, %v50_v21 }
   0x7   :  { %v3545_v24 = vsub.f32 %v44_v11, %v3526_v16  ;;  %2740 = vmatprep.subr.mxu0 %v4827_v0  ;;  %v3551_v27 = vsub.f32 %v47_v12, %v3535_v19  ;;  %v225_v28 = vand.u32 4294901760, %v3538_v20  ;;  %v3556_v30 = vand.u32 4294901760, %v53_v22  ;;  %v741_v11 = vld [vmem:[%s4805_s3 + $0x58] sm:$0xff] }
   0x8   :  { %2741 = vmatpush3.msra.mxu0 %v3497_v6  ;;  %v205_v31 = vsub.f32 %v3524_v15, %v204_v23  ;;  %v212_v33 = vsub.f32 %v3529_v17, %v211_v25  ;;  %v219_v34 = vsub.f32 %v3532_v18, %v218_v26  ;;  %v3575_v37 = vsub.f32 %v50_v21, %v3554_v29 }
   0x9   :  { %v129_v32 = vand.u32 4294901760, %v3545_v24  ;;  %2742 = vmatprep.subr.mxu0 %v4827_v0  ;;  %v139_v35 = vand.u32 4294901760, %v3551_v27  ;;  %v226_v36 = vsub.f32 %v3538_v20, %v225_v28  ;;  %v3585_v42 = vsub.f32 %v53_v22, %v3556_v30 }
   0xa   :  { %2743 = vmatpush3.msra.mxu0 %v3512_v10  ;;  %v206_v39 = vand.u32 4294901760, %v205_v31  ;;  %v213_v41 = vand.u32 4294901760, %v212_v33  ;;  %v149_v44 = vand.u32 4294901760, %v3575_v37  ;;  %v220_v46 = vand.u32 4294901760, %v219_v34 }
   0xb   :  { %v130_v40 = vsub.f32 %v3545_v24, %v129_v32  ;;  %v140_v43 = vsub.f32 %v3551_v27, %v139_v35  ;;  %2782 = vmatprep.subr.mxu0 %v4827_v0  ;;  %v56_v47 = vsel %vm42_vm0, %v30_v38, 0  ;;  %v227_v50 = vand.u32 4294901760, %v226_v36 }
   0xc   :  { %2760 = vmatpush3.msra.mxu1 %v206_v39  ;;  %v3594_v48 = vand.u32 4294901760, %v56_v47  ;;  %v150_v51 = vsub.f32 %v3575_v37, %v149_v44  ;;  %v159_v52 = vand.u32 4294901760, %v3585_v42  ;;  %v3742_v61 = vand.u32 4294901760, %v745_v60 }
   0xd   :  { %v131_v45 = vand.u32 4294901760, %v130_v40  ;;  %2761 = vmatprep.subr.mxu1 %v4827_v0  ;;  %v141_v49 = vand.u32 4294901760, %v140_v43  ;;  %v3750_v1 = vand.u32 4294901760, %v744_v62 }
   0xe   :  { %2762 = vmatpush3.msra.mxu1 %v213_v41  ;;  %v3604_v53 = vsub.f32 %v56_v47, %v3594_v48  ;;  %v151_v54 = vand.u32 4294901760, %v150_v51  ;;  %v160_v55 = vsub.f32 %v3585_v42, %v159_v52  ;;  %v3748_v63 = vsub.f32 %v745_v60, %v3742_v61  ;;  %v736_v41 = vld [vmem:[%s4805_s3 + $0x30] sm:$0xff]  ;;  %v735_v47 = vld [vmem:[%s4805_s3 + $0x28] sm:$0xff] }
   0xf   :  { %2745 = vmatmul.mubr.f32.vlgmr.msra.gmra.mxu0 %v131_v45  ;;  %2763 = vmatprep.subr.mxu1 %v4827_v0  ;;  %v3874_v51 = vand.u32 4294901760, %v735_v47 }
  0x10   :  { %2747 = vmatprep.mubr.msk.f32.mxu0 %vm3441_vm1, %v4827_v0  ;;  %2764 = vmatpush3.msra.mxu1 %v220_v46  ;;  %v169_v56 = vand.u32 4294901760, %v3604_v53  ;;  %v161_v57 = vand.u32 4294901760, %v160_v55  ;;  %v4826_v3 = vand.u32 4294901760, %v3748_v63  ;;  %v3863_v46 = vand.u32 4294901760, %v736_v41 }
  0x11   :  { %2783 = vmatpush3.msra.mxu0 %v3524_v15  ;;  %2765 = vmatprep.subr.mxu1 %v4827_v0 }
  0x12   :  { %2784 = vmatprep.subr.mxu0 %v4827_v0  ;;  %2766 = vmatpush3.msra.mxu1 %v227_v50  ;;  %v170_v58 = vsub.f32 %v3604_v53, %v169_v56  ;;  %v888_v7 = vsub.f32 %v3748_v63, %v4826_v3 }
  0x13   :  { %2748 = vmatmul.mubr.f32.gmra.mxu0 %v141_v49  ;;  %2768 = vmatmul.mubr.f32.vlgmr.msra.gmra.mxu1 %v3526_v16 }
  0x14   :  { %2805 = vmatprep.subr.mxu1 %v4827_v0  ;;  %2750 = vmatprep.mubr.msk.f32.mxu0 %vm3441_vm1, %v4827_v0  ;;  %v171_v59 = vand.u32 4294901760, %v170_v58  ;;  %v889_v12 = vand.u32 4294901760, %v888_v7 }
  0x15   :  { %2806 = vmatpush3.msra.mxu1 %v3493_v4  ;;  %2770 = vmatprep.mubr.msk.f32.mxu1 %vm3441_vm1, %v4827_v0 }
  0x16   :  { %2785 = vmatpush3.msra.mxu0 %v3529_v17  ;;  %2807 = vmatprep.subr.mxu1 %v4827_v0  ;;  %v740_v17 = vld [vmem:[%s4805_s3 + $0x50] sm:$0xff] }
  0x17   :  { %2751 = vmatmul.mubr.f32.gmra.mxu0 %v151_v54  ;;  %2771 = vmatmul.mubr.f32.gmra.mxu1 %v3535_v19  ;;  %v3800_v21 = vand.u32 4294901760, %v740_v17 }
  0x18   :  { %2753 = vmatprep.mubr.msk.f32.mxu0 %vm3441_vm1, %v4827_v0  ;;  %2808 = vmatpush3.msra.mxu1 %v3495_v5 }
  0x19   :  { %2773 = vmatprep.mubr.msk.f32.mxu1 %vm3441_vm1, %v4827_v0  ;;  %2786 = vmatprep.subr.mxu0 %v4827_v0 }
  0x1a   :  { %2809 = vmatprep.subr.mxu1 %v4827_v0  ;;  %2787 = vmatpush3.msra.mxu0 %v3532_v18 }
  0x1b   :  { %2754 = vmatmul.mubr.f32.gmra.mxu0 %v161_v57  ;;  %2810 = vmatpush3.msra.mxu1 %v3497_v6 }
  0x1c   :  { %2774 = vmatmul.mubr.f32.gmra.mxu1 %v3554_v29  ;;  %2756 = vmatprep.mubr.msk.f32.mxu0 %vm3441_vm1, %v4827_v0 }
  0x1d   :  { %2776 = vmatprep.mubr.msk.f32.mxu1 %vm3441_vm1, %v4827_v0  ;;  %2788 = vmatprep.subr.mxu0 %v4827_v0 }
  0x1e   :  { %2811 = vmatprep.subr.mxu1 %v4827_v0  ;;  %2789 = vmatpush3.msra.mxu0 %v3538_v20 }
  0x1f   :  { %2757 = vmatmul.mubr.f32.gmra.mxu0 %v171_v59  ;;  %2812 = vmatpush3.msra.mxu1 %v3512_v10  ;;  %v733_v59 = vld [vmem:[%s4805_s3 + $0x18] sm:$0xff] }
  0x20   :  { %2777 = vmatmul.mubr.f32.gmra.mxu1 %v3556_v30  ;;  %2790 = vmatprep.mubr.msk.f32.mxu0 %vm3441_vm1, %v4827_v0 }
  0x21   :  { %2779 = vmatprep.mubr.msk.f32.mxu1 %vm3441_vm1, %v4827_v0  ;;  %2828 = vmatprep.subr.mxu0 %v4827_v0 }
  0x22   :  { %2851 = vmatprep.subr.mxu1 %v4827_v0 }
  0x23   :  { %2791 = vmatmul.mubr.f32.vlgmr.msra.gmra.mxu0 %v3545_v24 }
  0x24   :  { %2780 = vmatmul.mubr.f32.gmra.mxu1 %v3594_v48  ;;  %2793 = vmatprep.mubr.msk.f32.mxu0 %vm3441_vm1, %v4827_v0 }
  0x25   :  { %2813 = vmatprep.mubr.msk.f32.mxu1 %vm3441_vm1, %v4827_v0  ;;  %2829 = vmatpush3.msra.mxu0 %v204_v23  ;;  %v739_v23 = vld [vmem:[%s4805_s3 + $0x48] sm:$0xff] }
  0x26   :  { %2830 = vmatprep.subr.mxu0 %v4827_v0 }
  0x27   :  { %2794 = vmatmul.mubr.f32.gmra.mxu0 %v3551_v27  ;;  %v3816_v27 = vand.u32 4294901760, %v739_v23 }
  0x28   :  { %2814 = vmatmul.mubr.f32.vlgmr.msra.gmra.mxu1 %v129_v32  ;;  %2796 = vmatprep.mubr.msk.f32.mxu0 %vm3441_vm1, %v4827_v0 }
  0x29   :  { %2852 = vmatpush3.msra.mxu1 %v3493_v4  ;;  %2816 = vmatprep.mubr.msk.f32.mxu1 %vm3441_vm1, %v4827_v0  ;;  %v3759_v4 = vsub.f32 %v744_v62, %v3750_v1  ;;  %v3827_v32 = vsub.f32 %v739_v23, %v3816_v27  ;;  %v731_v23 = vld [vmem:[%s4805_s3 + $0x8] sm:$0xff] }
  0x2a   :  { %2831 = vmatpush3.msra.mxu0 %v211_v25  ;;  %2853 = vmatprep.subr.mxu1 %v4827_v0 }
  0x2b   :  { %2797 = vmatmul.mubr.f32.gmra.mxu0 %v3575_v37  ;;  %2854 = vmatpush3.msra.mxu1 %v3495_v5  ;;  %v3761_v5 = vand.u32 4294901760, %v743_v2  ;;  %v4825_v8 = vand.u32 4294901760, %v3759_v4  ;;  %v4820_v37 = vand.u32 4294901760, %v3827_v32 }
  0x2c   :  { %2817 = vmatmul.mubr.f32.gmra.mxu1 %v139_v35  ;;  %2799 = vmatprep.mubr.msk.f32.mxu0 %vm3441_vm1, %v4827_v0  ;;  %v737_v35 = vld [vmem:[%s4805_s3 + $0x38] sm:$0xff] }
  0x2d   :  { %2819 = vmatprep.mubr.msk.f32.mxu1 %vm3441_vm1, %v4827_v0  ;;  %2832 = vmatprep.subr.mxu0 %v4827_v0  ;;  %v3773_v9 = vsub.f32 %v743_v2, %v3761_v5  ;;  %v895_v13 = vsub.f32 %v3759_v4, %v4825_v8  ;;  %v3847_v39 = vand.u32 4294901760, %v737_v35  ;;  %v930_v43 = vsub.f32 %v3827_v32, %v4820_v37 }
  0x2e   :  { %2833 = vmatpush3.msra.mxu0 %v218_v26  ;;  %2855 = vmatprep.subr.mxu1 %v4827_v0  ;;  %v3814_v26 = vsub.f32 %v740_v17, %v3800_v21 }
  0x2f   :  { %2800 = vmatmul.mubr.f32.gmra.mxu0 %v3585_v42  ;;  %2856 = vmatpush3.msra.mxu1 %v3497_v6  ;;  %v742_v6 = vld [vmem:[%s4805_s3 + $0x60] sm:$0xff]  ;;  %v4824_v14 = vand.u32 4294901760, %v3773_v9  ;;  %v896_v18 = vand.u32 4294901760, %v895_v13  ;;  %v3860_v45 = vsub.f32 %v737_v35, %v3847_v39 }
  0x30   :  { %2820 = vmatmul.mubr.f32.gmra.mxu1 %v149_v44  ;;  %2802 = vmatprep.mubr.msk.f32.mxu0 %vm3441_vm1, %v4827_v0  ;;  %v4821_v31 = vand.u32 4294901760, %v3814_v26  ;;  %v730_v35 = vld [vmem:[%s4805_s3] sm:$0xff] }
  0x31   :  { %2822 = vmatprep.mubr.msk.f32.mxu1 %vm3441_vm1, %v4827_v0  ;;  %2834 = vmatprep.subr.mxu0 %v4827_v0  ;;  %v4818_v50 = vand.u32 4294901760, %v3860_v45 }
  0x32   :  { %2835 = vmatpush3.msra.mxu0 %v225_v28  ;;  %2857 = vmatprep.subr.mxu1 %v4827_v0  ;;  %v923_v36 = vsub.f32 %v3814_v26, %v4821_v31 }
  0x33   :  { %2803 = vmatmul.mubr.f32.gmra.mxu0 %v3604_v53  ;;  %2858 = vmatpush3.msra.mxu1 %v3512_v10  ;;  %v3775_v10 = vand.u32 4294901760, %v742_v6  ;;  %v734_v53 = vld [vmem:[%s4805_s3 + $0x20] sm:$0xff]  ;;  %v944_v55 = vsub.f32 %v3860_v45, %v4818_v50 }
  0x34   :  { %2823 = vmatmul.mubr.f32.gmra.mxu1 %v159_v52  ;;  %2836 = vmatprep.mubr.msk.f32.mxu0 %vm3441_vm1, %v4827_v0  ;;  %v924_v42 = vand.u32 4294901760, %v923_v36  ;;  %v3878_v52 = vsub.f32 %v736_v41, %v3863_v46  ;;  %v3891_v57 = vand.u32 4294901760, %v734_v53 }
  0x35   :  { %2825 = vmatprep.mubr.msk.f32.mxu1 %vm3441_vm1, %v4827_v0  ;;  %2921 = vmatprep.subr.mxu1 %v4827_v0  ;;  %v3787_v15 = vsub.f32 %v742_v6, %v3775_v10  ;;  %v945_v60 = vand.u32 4294901760, %v944_v55  ;;  %v3904_v6 = vand.u32 4294901760, %v733_v59 }
  0x36   :  { %2874 = vmatprep.subr.mxu0 %v4827_v0  ;;  %v4817_v58 = vand.u32 4294901760, %v3878_v52  ;;  %v3902_v2 = vsub.f32 %v734_v53, %v3891_v57 }
  0x37   :  { %2837 = vmatmul.mubr.f32.vlgmr.msra.gmra.mxu0 %v3526_v16  ;;  %v4823_v20 = vand.u32 4294901760, %v3787_v15  ;;  %v3920_v17 = vsub.f32 %v733_v59, %v3904_v6 }
  0x38   :  { %2826 = vmatmul.mubr.f32.gmra.mxu1 %v169_v56  ;;  %2839 = vmatprep.mubr.msk.f32.mxu0 %vm3441_vm1, %v4827_v0  ;;  %v3889_v56 = vsub.f32 %v735_v47, %v3874_v51  ;;  %4870 = vst [vmem:[#allocation3_spill] sm:$0xff] %v3902_v2  ;;  %v951_v7 = vsub.f32 %v3878_v52, %v4817_v58  ;;  %v4815_v13 = vand.u32 4294901760, %v3902_v2 }
  0x39   :  { %2859 = vmatprep.mubr.msk.f32.mxu1 %vm3441_vm1, %v4827_v0  ;;  %2875 = vmatpush3.msra.mxu0 %v3742_v61  ;;  %v909_v25 = vsub.f32 %v3787_v15, %v4823_v20  ;;  %4871 = vst [vmem:[#allocation4_spill] sm:$0xff] %v3920_v17 }
  0x3a   :  { %2876 = vmatprep.subr.mxu0 %v4827_v0  ;;  %4869 = vst [vmem:[#allocation2_spill] sm:$0xff] %v3889_v56  ;;  %v4816_v62 = vand.u32 4294901760, %v3889_v56 }
  0x3b   :  { %2840 = vmatmul.mubr.f32.gmra.mxu0 %v3535_v19 }
  0x3c   :  { %2860 = vmatmul.mubr.f32.vlgmr.msra.gmra.mxu1 %v3526_v16  ;;  %2842 = vmatprep.mubr.msk.f32.mxu0 %vm3441_vm1, %v4827_v0  ;;  %v3790_v16 = vand.u32 4294901760, %v741_v11 }
  0x3d   :  { %2862 = vmatprep.mubr.msk.f32.mxu1 %vm3441_vm1, %v4827_v0  ;;  %2877 = vmatpush3.msra.mxu0 %v3750_v1 }
  0x3e   :  { %2878 = vmatprep.subr.mxu0 %v4827_v0  ;;  %2922 = vmatpush3.msra.mxu1 %v889_v12  ;;  %v3804_v22 = vsub.f32 %v741_v11, %v3790_v16  ;;  %v732_v11 = vld [vmem:[%s4805_s3 + $0x10] sm:$0xff]  ;;  %v958_v12 = vsub.f32 %v3889_v56, %v4816_v62 }
  0x3f   :  { %2843 = vmatmul.mubr.f32.gmra.mxu0 %v3554_v29  ;;  %2923 = vmatprep.subr.mxu1 %v4827_v0 }
  0x40   :  { %2863 = vmatmul.mubr.f32.gmra.mxu1 %v3535_v19  ;;  %2845 = vmatprep.mubr.msk.f32.mxu0 %vm3441_vm1, %v4827_v0  ;;  %v902_v19 = vsub.f32 %v3773_v9, %v4824_v14  ;;  %v4822_v28 = vand.u32 4294901760, %v3804_v22 }
  0x41   :  { %2865 = vmatprep.mubr.msk.f32.mxu1 %vm3441_vm1, %v4827_v0  ;;  %2879 = vmatpush3.msra.mxu0 %v3761_v5 }
  0x42   :  { %2880 = vmatprep.subr.mxu0 %v4827_v0  ;;  %2924 = vmatpush3.msra.mxu1 %v896_v18  ;;  %v903_v24 = vand.u32 4294901760, %v902_v19  ;;  %v916_v34 = vsub.f32 %v3804_v22, %v4822_v28  ;;  %v3922_v18 = vand.u32 4294901760, %v732_v11  ;;  %v952_v19 = vand.u32 4294901760, %v951_v7 }
  0x43   :  { %2846 = vmatmul.mubr.f32.gmra.mxu0 %v3556_v30  ;;  %2925 = vmatprep.subr.mxu1 %v4827_v0 }
  0x44   :  { %2866 = vmatmul.mubr.f32.gmra.mxu1 %v3554_v29  ;;  %2848 = vmatprep.mubr.msk.f32.mxu0 %vm3441_vm1, %v4827_v0  ;;  %v738_v29 = vld [vmem:[%s4805_s3 + $0x40] sm:$0xff]  ;;  %v917_v40 = vand.u32 4294901760, %v916_v34  ;;  %v3938_v34 = vand.u32 4294901760, %v731_v23 }
  0x45   :  { %2868 = vmatprep.mubr.msk.f32.mxu1 %vm3441_vm1, %v4827_v0  ;;  %2881 = vmatpush3.msra.mxu0 %v3775_v10  ;;  %v3829_v33 = vand.u32 4294901760, %v738_v29 }
  0x46   :  { %2882 = vmatprep.subr.mxu0 %v4827_v0  ;;  %2926 = vmatpush3.msra.mxu1 %v903_v24  ;;  %v959_v24 = vand.u32 4294901760, %v958_v12  ;;  %4873 = vst [vmem:[#allocation6_spill] sm:$0xff] %v3938_v34 }
  0x47   :  { %2849 = vmatmul.mubr.f32.gmra.mxu0 %v3594_v48  ;;  %2927 = vmatprep.subr.mxu1 %v4827_v0  ;;  %v3845_v38 = vsub.f32 %v738_v29, %v3829_v33  ;;  %v4814_v29 = vand.u32 4294901760, %v3920_v17 }
  0x48   :  { %2869 = vmatmul.mubr.f32.gmra.mxu1 %v3556_v30  ;;  %2906 = vmatprep.mubr.msk.f32.mxu0 %vm3441_vm1, %v4827_v0  ;;  %v910_v30 = vand.u32 4294901760, %v909_v25  ;;  %v965_v25 = vsub.f32 %v3902_v2, %v4815_v13 }
  0x49   :  { %2871 = vmatprep.mubr.msk.f32.mxu1 %vm3441_vm1, %v4827_v0  ;;  %2883 = vmatpush3.msra.mxu0 %v3790_v16  ;;  %v4819_v44 = vand.u32 4294901760, %v3845_v38 }
  0x4a   :  { %2884 = vmatprep.subr.mxu0 %v4827_v0  ;;  %2928 = vmatpush3.msra.mxu1 %v910_v30  ;;  %v3935_v30 = vsub.f32 %v732_v11, %v3922_v18  ;;  %v966_v36 = vand.u32 4294901760, %v965_v25 }
  0x4b   :  { %2885 = vmatpush3.msra.mxu0 %v3800_v21  ;;  %2929 = vmatprep.subr.mxu1 %v4827_v0  ;;  %v937_v49 = vsub.f32 %v3845_v38, %v4819_v44 }
  0x4c   :  { %2872 = vmatmul.mubr.f32.gmra.mxu1 %v3594_v48  ;;  %2886 = vmatprep.subr.mxu0 %v4827_v0  ;;  %v931_v48 = vand.u32 4294901760, %v930_v43  ;;  %4872 = vst [vmem:[#allocation5_spill] sm:$0xff] %v3935_v30  ;;  %v4813_v41 = vand.u32 4294901760, %v3935_v30  ;;  %v3953_v43 = vsub.f32 %v731_v23, %v3938_v34 }
  0x4d   :  { %2953 = vmatprep.mubr.msk.f32.mxu1 %vm3441_vm1, %v4827_v0  ;;  %2887 = vmatpush3.msra.mxu0 %v3816_v27  ;;  %v938_v54 = vand.u32 4294901760, %v937_v49 }
  0x4e   :  { %2888 = vmatprep.subr.mxu0 %v4827_v0  ;;  %2930 = vmatpush3.msra.mxu1 %v917_v40  ;;  %v972_v40 = vsub.f32 %v3920_v17, %v4814_v29  ;;  %4875 = vst [vmem:[#allocation8_spill] sm:$0xff] %v3953_v43  ;;  %v4812_v53 = vand.u32 4294901760, %v3953_v43 }
  0x4f   :  { %2889 = vmatpush3.msra.mxu0 %v3829_v33  ;;  %2931 = vmatprep.subr.mxu1 %v4827_v0 }
  0x50   :  { %2890 = vmatprep.subr.mxu0 %v4827_v0  ;;  %2932 = vmatpush3.msra.mxu1 %v924_v42  ;;  %v3949_v42 = vand.u32 4294901760, %v730_v35  ;;  %v973_v47 = vand.u32 4294901760, %v972_v40  ;;  %v986_v59 = vsub.f32 %v3953_v43, %v4812_v53 }
  0x51   :  { %2891 = vmatpush3.msra.mxu0 %v3847_v39  ;;  %2933 = vmatprep.subr.mxu1 %v4827_v0 }
  0x52   :  { %2892 = vmatprep.subr.mxu0 %v4827_v0  ;;  %2934 = vmatpush3.msra.mxu1 %v931_v48  ;;  %4874 = vst [vmem:[#allocation7_spill] sm:$0xff] %v3949_v42  ;;  %v979_v48 = vsub.f32 %v3935_v30, %v4813_v41  ;;  %v3961_v49 = vsub.f32 %v730_v35, %v3949_v42  ;;  %v987_v7 = vand.u32 4294901760, %v986_v59 }
  0x53   :  { %2893 = vmatpush3.msra.mxu0 %v3863_v46  ;;  %2935 = vmatprep.subr.mxu1 %v4827_v0 }
  0x54   :  { %2894 = vmatprep.subr.mxu0 %v4827_v0  ;;  %2936 = vmatpush3.msra.mxu1 %v938_v54  ;;  %4876 = vst [vmem:[#allocation9_spill] sm:$0xff] %v3961_v49  ;;  %v980_v54 = vand.u32 4294901760, %v979_v48  ;;  %v4811_v55 = vand.u32 4294901760, %v3961_v49 }
  0x55   :  { %2895 = vmatpush3.msra.mxu0 %v3874_v51  ;;  %2937 = vmatprep.subr.mxu1 %v4827_v0 }
  0x56   :  { %2896 = vmatprep.subr.mxu0 %v4827_v0  ;;  %2938 = vmatpush3.msra.mxu1 %v945_v60  ;;  %v993_v60 = vsub.f32 %v3961_v49, %v4811_v55 }
  0x57   :  { %2897 = vmatpush3.msra.mxu0 %v3891_v57  ;;  %2939 = vmatprep.subr.mxu1 %v4827_v0 }
  0x58   :  { %2898 = vmatprep.subr.mxu0 %v4827_v0  ;;  %2940 = vmatpush3.msra.mxu1 %v952_v19  ;;  %v994_v11 = vand.u32 4294901760, %v993_v60 }
  0x59   :  { %2899 = vmatpush3.msra.mxu0 %v3904_v6  ;;  %2941 = vmatprep.subr.mxu1 %v4827_v0 }
  0x5a   :  { %2900 = vmatprep.subr.mxu0 %v4827_v0  ;;  %2942 = vmatpush3.msra.mxu1 %v959_v24 }
  0x5b   :  { %2901 = vmatpush3.msra.mxu0 %v3922_v18  ;;  %2943 = vmatprep.subr.mxu1 %v4827_v0 }
  0x5c   :  { %2902 = vmatprep.subr.mxu0 %v4827_v0  ;;  %2944 = vmatpush3.msra.mxu1 %v966_v36 }
  0x5d   :  { %2903 = vmatpush3.msra.mxu0 %v3938_v34  ;;  %2945 = vmatprep.subr.mxu1 %v4827_v0 }
  0x5e   :  { %2904 = vmatprep.subr.mxu0 %v4827_v0  ;;  %2946 = vmatpush3.msra.mxu1 %v973_v47 }
  0x5f   :  { %2905 = vmatpush3.msra.mxu0 %v3949_v42  ;;  %2947 = vmatprep.subr.mxu1 %v4827_v0 }
  0x60   :  { %2968 = vmatprep.subr.mxu0 %v4827_v0  ;;  %2948 = vmatpush3.msra.mxu1 %v980_v54 }
  0x61   :  { %2949 = vmatprep.subr.mxu1 %v4827_v0 }
  0x62   :  { %2950 = vmatpush3.msra.mxu1 %v987_v7 }
  0x63   :  { %2951 = vmatprep.subr.mxu1 %v4827_v0 }
  0x64   :  { %2952 = vmatpush3.msra.mxu1 %v994_v11 }
  0x65   :  { %3015 = vmatprep.subr.mxu1 %v4827_v0 }
  0xcf   :  { %v133_v12 = vpop.f32.mrf.mxu0 }
  0xd1   :  { %v2746_v19 = vpop.f32.mrf.mxu0 }
  0xd3   :  { %v143_v23 = vpop.f32.mrf.mxu0  ;;  %v264_v24 = vpop.f32.mrf.mxu1 }
  0xd5   :  { %v2749_v25 = vpop.f32.mrf.mxu0  ;;  %v2769_v35 = vpop.f32.mrf.mxu1 }
  0xd7   :  { %v153_v36 = vpop.f32.mrf.mxu0  ;;  %v270_v40 = vpop.f32.mrf.mxu1 }
  0xd9   :  { %v2752_v47 = vpop.f32.mrf.mxu0  ;;  %v2772_v48 = vpop.f32.mrf.mxu1 }
  0xdb   :  { %v163_v54 = vpop.f32.mrf.mxu0 }
  0xdc   :  { %v276_v59 = vpop.f32.mrf.mxu1 }
  0xdd   :  { %v2755_v55 = vpop.f32.mrf.mxu0 }
  0xde   :  { %v2775_v60 = vpop.f32.mrf.mxu1  ;;  %v2427_v55 = vld [vmem:[%s4806_s2] ss:$0 sm:$0xff] }
  0xdf   :  { %v173_v7 = vpop.f32.mrf.mxu0 }
  0xe0   :  { %v282_v53 = vpop.f32.mrf.mxu1 }
  0xe1   :  { %v2758_v41 = vpop.f32.mrf.mxu0 }
  0xe2   :  { %v2778_v11 = vpop.f32.mrf.mxu1  ;;  %v134_v41 = vadd.f32 %v2427_v55, %v133_v12 }
  0xe3   :  { %v368_v29 = vpop.f32.mrf.mxu0 }
  0xe4   :  { %v288_v13 = vpop.f32.mrf.mxu1  ;;  %v265_v14 = vadd.f32 %v264_v24, %v134_v41 }
  0xe5   :  { %v2792_v62 = vpop.f32.mrf.mxu0 }
  0xe6   :  { %v2781_v19 = vpop.f32.mrf.mxu1 }
  0xe7   :  { %v375_v58 = vpop.f32.mrf.mxu0  ;;  %v144_v19 = vadd.f32 %v2427_v55, %v143_v23 }
  0xe8   :  { %v473_v50 = vpop.f32.mrf.mxu1 }
  0xe9   :  { %v2795_v25 = vpop.f32.mrf.mxu0  ;;  %v271_v49 = vadd.f32 %v270_v40, %v144_v19 }
  0xea   :  { %v2815_v35 = vpop.f32.mrf.mxu1 }
  0xeb   :  { %v382_v44 = vpop.f32.mrf.mxu0  ;;  %v369_v35 = vadd.f32 %v368_v29, %v265_v14 }
  0xec   :  { %v481_v37 = vpop.f32.mrf.mxu1 }
  0xed   :  { %v2798_v47 = vpop.f32.mrf.mxu0  ;;  %v474_v43 = vadd.f32 %v473_v50, %v369_v35 }
  0xee   :  { %v2818_v48 = vpop.f32.mrf.mxu1  ;;  %v154_v47 = vadd.f32 %v2427_v55, %v153_v36  ;;  %v174_v36 = vadd.f32 %v2427_v55, %v173_v7 }
  0xef   :  { %v389_v60 = vpop.f32.mrf.mxu0  ;;  %v376_v48 = vadd.f32 %v375_v58, %v271_v49 }
  0xf0   :  { %v489_v31 = vpop.f32.mrf.mxu1 }
  0xf1   :  { %v2801_v11 = vpop.f32.mrf.mxu0  ;;  %v482_v56 = vadd.f32 %v481_v37, %v376_v48 }
  0xf2   :  { %v2821_v28 = vpop.f32.mrf.mxu1  ;;  %v164_v11 = vadd.f32 %v2427_v55, %v163_v54  ;;  %v4877_v55 = vmov 0.0  }
  0xf3   :  { %v396_v20 = vpop.f32.mrf.mxu0  ;;  %v277_v28 = vadd.f32 %v276_v59, %v154_v47 }
  0xf4   :  { %v497_v62 = vpop.f32.mrf.mxu1  ;;  %v283_v50 = vadd.f32 %v282_v53, %v164_v11 }
  0xf5   :  { %v2804_v8 = vpop.f32.mrf.mxu0 }
  0xf6   :  { %v2824_v25 = vpop.f32.mrf.mxu1  ;;  %v383_v8 = vadd.f32 %v382_v44, %v277_v28  ;;  %v390_v54 = vadd.f32 %v389_v60, %v283_v50  ;;  %v289_v44 = vadd.f32 %v288_v13, %v174_v36 }
  0xf7   :  { %v588_v3 = vpop.f32.mrf.mxu0 }
  0xf8   :  { %v505_v0 = vpop.f32.mrf.mxu1  ;;  %v589_v2 = vadd.f32 %v588_v3, %v474_v43  ;;  %v498_v53 = vadd.f32 %v497_v62, %v390_v54  ;;  %v397_v25 = vadd.f32 %v396_v20, %v289_v44 }
  0xf9   :  { %v2838_v30 = vpop.f32.mrf.mxu0 }
  0xfa   :  { %v2827_v17 = vpop.f32.mrf.mxu1  ;;  %v490_v30 = vadd.f32 %v489_v31, %v383_v8  ;;  %v506_v28 = vadd.f32 %v505_v0, %v397_v25 }
  0xfb   :  { %v594_v42 = vpop.f32.mrf.mxu0 }
  0xfc   :  { %v687_v12 = vpop.f32.mrf.mxu1  ;;  %v595_v41 = vadd.f32 %v594_v42, %v482_v56 }
  0xfd   :  { %v2841_v34 = vpop.f32.mrf.mxu0  ;;  %v688_v23 = vadd.f32 %v687_v12, %v589_v2 }
  0xfe   :  { %v2861_v24 = vpop.f32.mrf.mxu1 }
  0xff   :  { %vm715_vm2 = vcmp.gt.f32.partialorder %v688_v23, 0.0  ;;  %v720_v14 = vmul.f32 0.5, %v688_v23  ;;  %v600_v29 = vpop.f32.mrf.mxu0 }
 0x100   :  { %v693_v40 = vpop.f32.mrf.mxu1  ;;  %v601_v37 = vadd.f32 %v600_v29, %v490_v30 }
 0x101   :  { %v725_v17 = vsel %vm715_vm2, %v688_v23, %v720_v14  ;;  %v2844_v58 = vpop.f32.mrf.mxu0  ;;  %v694_v3 = vadd.f32 %v693_v40, %v595_v41 }
 0x102   :  { %v3982_v43 = vand.u32 4294901760, %v725_v17  ;;  %v2864_v49 = vpop.f32.mrf.mxu1 }
 0x103   :  { %vm716_vm3 = vcmp.gt.f32.partialorder %v694_v3, 0.0  ;;  %v721_v2 = vmul.f32 0.5, %v694_v3  ;;  %v606_v34 = vpop.f32.mrf.mxu0 }
 0x104   :  { %v3985_v56 = vsub.f32 %v725_v17, %v3982_v43  ;;  %v699_v42 = vpop.f32.mrf.mxu1  ;;  %2954 = vmatmul.mubr.f32.vlgmr.msra.gmra.mxu1 %v3982_v43  ;;  %v607_v35 = vadd.f32 %v606_v34, %v498_v53 }
 0x105   :  { %v726_v31 = vsel %vm716_vm3, %v694_v3, %v721_v2  ;;  %v2847_v59 = vpop.f32.mrf.mxu0  ;;  %v700_v7 = vadd.f32 %v699_v42, %v601_v37  ;;  %3016 = vmatpush3.msra.mxu1 %v3742_v61  ;;  %2956 = vmatprep.mubr.msk.f32.mxu1 %vm3441_vm1, %v4877_v55 }
 0x106   :  { %v836_v60 = vand.u32 4294901760, %v3985_v56  ;;  %v3992_v19 = vand.u32 4294901760, %v726_v31  ;;  %3017 = vmatprep.subr.mxu1 %v4877_v55  ;;  %v2867_v13 = vpop.f32.mrf.mxu1 }
 0x107   :  { %vm717_vm4 = vcmp.gt.f32.partialorder %v700_v7, 0.0  ;;  %v722_v47 = vmul.f32 0.5, %v700_v7  ;;  %v612_v62 = vpop.f32.mrf.mxu0  ;;  %3018 = vmatpush3.msra.mxu1 %v3750_v1 }
 0x108   :  { %v837_v48 = vsub.f32 %v3985_v56, %v836_v60  ;;  %v4000_v12 = vsub.f32 %v726_v31, %v3992_v19  ;;  %3019 = vmatprep.subr.mxu1 %v4877_v55  ;;  %v705_v11 = vpop.f32.mrf.mxu1  ;;  %2957 = vmatmul.mubr.f32.gmra.mxu1 %v3992_v19  ;;  %v613_v36 = vadd.f32 %v612_v62, %v506_v28  ;;  %v4880_v28 = vld [vmem:[#allocation7_spill] sm:$0xff] }
 0x109   :  { %v727_v20 = vsel %vm717_vm4, %v700_v7, %v722_v47  ;;  %v706_v23 = vadd.f32 %v705_v11, %v607_v35  ;;  %3020 = vmatpush3.msra.mxu1 %v3761_v5  ;;  %2959 = vmatprep.mubr.msk.f32.mxu1 %vm3441_vm1, %v4877_v55  ;;  %v2850_v24 = vpop.f32.mrf.mxu0  ;;  %v4879_v11 = vld [vmem:[#allocation2_spill] sm:$0xff] }
 0x10a   :  { %v838_v8 = vand.u32 4294901760, %v837_v48  ;;  %v4007_v41 = vand.u32 4294901760, %v727_v20  ;;  %3021 = vmatprep.subr.mxu1 %v4877_v55  ;;  %v2870_v14 = vpop.f32.mrf.mxu1  ;;  %v846_v29 = vand.u32 4294901760, %v4000_v12  ;;  %v4878_v48 = vld [vmem:[#allocation6_spill] sm:$0xff]  ;;  %v4883_v24 = vld [vmem:[#allocation5_spill] sm:$0xff] }
 0x10b   :  { %vm718_vm5 = vcmp.gt.f32.partialorder %v706_v23, 0.0  ;;  %v723_v40 = vmul.f32 0.5, %v706_v23  ;;  %3022 = vmatpush3.msra.mxu1 %v3775_v10 }
 0x10c   :  { %v4013_v0 = vsub.f32 %v727_v20, %v4007_v41  ;;  %3023 = vmatprep.subr.mxu1 %v4877_v55  ;;  %v711_v50 = vpop.f32.mrf.mxu1  ;;  %2907 = vmatmul.mubr.f32.vlgmr.msra.gmra.mxu0 %v838_v8  ;;  %v847_v30 = vsub.f32 %v4000_v12, %v846_v29  ;;  %v4881_v20 = vld [vmem:[#allocation3_spill] sm:$0xff] }
 0x10d   :  { %v728_v17 = vsel %vm718_vm5, %v706_v23, %v723_v40  ;;  %v712_v58 = vadd.f32 %v711_v50, %v613_v36  ;;  %2960 = vmatmul.mubr.f32.gmra.mxu1 %v4007_v41  ;;  %2969 = vmatpush3.msra.mxu0 %v3748_v63  ;;  %v4882_v23 = vld [vmem:[#allocation4_spill] sm:$0xff] }
 0x10e   :  { %v4021_v3 = vand.u32 4294901760, %v728_v17  ;;  %3024 = vmatpush3.msra.mxu1 %v3790_v16  ;;  %2970 = vmatprep.subr.mxu0 %v4877_v55  ;;  %v848_v49 = vand.u32 4294901760, %v847_v30  ;;  %v856_v54 = vand.u32 4294901760, %v4013_v0  ;;  %v2873_v37 = vpop.f32.mrf.mxu1 }
 0x10f   :  { %vm719_vm6 = vcmp.gt.f32.partialorder %v712_v58, 0.0  ;;  %v724_v2 = vmul.f32 0.5, %v712_v58  ;;  %3025 = vmatprep.subr.mxu1 %v4877_v55  ;;  %2971 = vmatpush3.msra.mxu0 %v3759_v4 }
 0x110   :  { %v4029_v34 = vsub.f32 %v728_v17, %v4021_v3  ;;  %3026 = vmatpush3.msra.mxu1 %v3800_v21  ;;  %2909 = vmatprep.mubr.msk.f32.mxu0 %vm3441_vm1, %v4877_v55  ;;  %v857_v44 = vsub.f32 %v4013_v0, %v856_v54  ;;  %v1591_v17 = vld [vmem:[%s4807_s5 + $0x50] sm:$0xff] }
 0x111   :  { %v729_v42 = vsel %vm719_vm6, %v712_v58, %v724_v2  ;;  %2962 = vmatprep.mubr.msk.f32.mxu1 %vm3441_vm1, %v4877_v55  ;;  %2972 = vmatprep.subr.mxu0 %v4877_v55  ;;  %v1590_v2 = vld [vmem:[%s4807_s5 + $0x48] sm:$0xff] }
 0x112   :  { %v4040_v53 = vand.u32 4294901760, %v729_v42  ;;  %3027 = vmatprep.subr.mxu1 %v4877_v55  ;;  %2910 = vmatmul.mubr.f32.gmra.mxu0 %v848_v49  ;;  %v866_v31 = vand.u32 4294901760, %v4029_v34  ;;  %v858_v7 = vand.u32 4294901760, %v857_v44 }
 0x113   :  { %2963 = vmatmul.mubr.f32.gmra.mxu1 %v4021_v3  ;;  %2973 = vmatpush3.msra.mxu0 %v3773_v9 }
 0x114   :  { %v4047_v59 = vsub.f32 %v729_v42, %v4040_v53  ;;  %3028 = vmatpush3.msra.mxu1 %v3816_v27  ;;  %2974 = vmatprep.subr.mxu0 %v4877_v55  ;;  %v867_v13 = vsub.f32 %v4029_v34, %v866_v31 }
 0x115   :  { %3029 = vmatprep.subr.mxu1 %v4877_v55  ;;  %2975 = vmatpush3.msra.mxu0 %v3787_v15 }
 0x116   :  { %3030 = vmatpush3.msra.mxu1 %v3829_v33  ;;  %2912 = vmatprep.mubr.msk.f32.mxu0 %vm3441_vm1, %v4877_v55  ;;  %v876_v25 = vand.u32 4294901760, %v4047_v59  ;;  %v868_v35 = vand.u32 4294901760, %v867_v13 }
 0x117   :  { %2965 = vmatprep.mubr.msk.f32.mxu1 %vm3441_vm1, %v4877_v55  ;;  %2976 = vmatprep.subr.mxu0 %v4877_v55 }
 0x118   :  { %3031 = vmatprep.subr.mxu1 %v4877_v55  ;;  %2913 = vmatmul.mubr.f32.gmra.mxu0 %v858_v7  ;;  %v877_v47 = vsub.f32 %v4047_v59, %v876_v25 }
 0x119   :  { %2966 = vmatmul.mubr.f32.gmra.mxu1 %v4040_v53  ;;  %2977 = vmatpush3.msra.mxu0 %v3804_v22 }
 0x11a   :  { %3032 = vmatpush3.msra.mxu1 %v3847_v39  ;;  %2978 = vmatprep.subr.mxu0 %v4877_v55  ;;  %v878_v62 = vand.u32 4294901760, %v877_v47 }
 0x11b   :  { %3033 = vmatprep.subr.mxu1 %v4877_v55  ;;  %2979 = vmatpush3.msra.mxu0 %v3814_v26 }
 0x11c   :  { %3034 = vmatpush3.msra.mxu1 %v3863_v46  ;;  %2915 = vmatprep.mubr.msk.f32.mxu0 %vm3441_vm1, %v4877_v55 }
 0x11d   :  { %2980 = vmatprep.subr.mxu0 %v4877_v55  ;;  %3035 = vmatprep.subr.mxu1 %v4877_v55 }
 0x11e   :  { %2916 = vmatmul.mubr.f32.gmra.mxu0 %v868_v35  ;;  %3036 = vmatpush3.msra.mxu1 %v3874_v51 }
 0x11f   :  { %2981 = vmatpush3.msra.mxu0 %v3827_v32  ;;  %3037 = vmatprep.subr.mxu1 %v4877_v55 }
 0x120   :  { %2982 = vmatprep.subr.mxu0 %v4877_v55  ;;  %3038 = vmatpush3.msra.mxu1 %v3891_v57 }
 0x121   :  { %2983 = vmatpush3.msra.mxu0 %v3845_v38  ;;  %2918 = vmatprep.mubr.msk.f32.mxu0 %vm3441_vm1, %v4877_v55 }
 0x122   :  { %2984 = vmatprep.subr.mxu0 %v4877_v55  ;;  %3039 = vmatprep.subr.mxu1 %v4877_v55 }
 0x123   :  { %2919 = vmatmul.mubr.f32.gmra.mxu0 %v878_v62  ;;  %3040 = vmatpush3.msra.mxu1 %v3904_v6  ;;  %v1588_v62 = vld [vmem:[%s4807_s5 + $0x38] sm:$0xff] }
 0x124   :  { %2985 = vmatpush3.msra.mxu0 %v3860_v45  ;;  %3041 = vmatprep.subr.mxu1 %v4877_v55 }
 0x125   :  { %2986 = vmatprep.subr.mxu0 %v4877_v55  ;;  %3042 = vmatpush3.msra.mxu1 %v3922_v18 }
 0x126   :  { %2987 = vmatpush3.msra.mxu0 %v3878_v52  ;;  %3043 = vmatprep.subr.mxu1 %v4877_v55 }
 0x127   :  { %2988 = vmatprep.subr.mxu0 %v4877_v55  ;;  %3044 = vmatpush3.msra.mxu1 %v4878_v48 }
 0x128   :  { %2989 = vmatpush3.msra.mxu0 %v4879_v11  ;;  %3045 = vmatprep.subr.mxu1 %v4877_v55 }
 0x129   :  { %2990 = vmatprep.subr.mxu0 %v4877_v55  ;;  %3046 = vmatpush3.msra.mxu1 %v4880_v28 }
 0x12a   :  { %2991 = vmatpush3.msra.mxu0 %v4881_v20  ;;  %3047 = vmatprep.mubr.msk.f32.mxu1 %vm3441_vm1, %v4877_v55 }
 0x12b   :  { %2992 = vmatprep.subr.mxu0 %v4877_v55  ;;  %3048 = vmatmul.mubr.f32.vlgmr.msra.gmra.mxu1 %v836_v60  ;;  %v4884_v60 = vld [vmem:[#allocation8_spill] sm:$0xff] }
 0x12c   :  { %3109 = vmatprep.subr.mxu1 %v4877_v55  ;;  %2993 = vmatpush3.msra.mxu0 %v4882_v23 }
 0x12d   :  { %3110 = vmatpush3.msra.mxu1 %v3742_v61  ;;  %2994 = vmatprep.subr.mxu0 %v4877_v55  ;;  %v4885_v61 = vld [vmem:[#allocation9_spill] sm:$0xff] }
 0x12e   :  { %3111 = vmatprep.subr.mxu1 %v4877_v55  ;;  %2995 = vmatpush3.msra.mxu0 %v4883_v24 }
 0x12f   :  { %3050 = vmatprep.mubr.msk.f32.mxu1 %vm3441_vm1, %v4877_v55  ;;  %3112 = vmatpush3.msra.mxu1 %v3750_v1  ;;  %v4886_v1 = vand.u32 4294901760, %v3748_v63  ;;  %v4888_v63 = vand.u32 4294901760, %v3773_v9  ;;  %v4890_v9 = vand.u32 4294901760, %v3804_v22  ;;  %v4895_v22 = vand.u32 4294901760, %v3878_v52 }
 0x130   :  { %2996 = vmatprep.subr.mxu0 %v4877_v55  ;;  %3051 = vmatmul.mubr.f32.gmra.mxu1 %v846_v29  ;;  %v1592_v29 = vld [vmem:[%s4807_s5 + $0x58] sm:$0xff] }
 0x131   :  { %3113 = vmatprep.subr.mxu1 %v4877_v55  ;;  %2997 = vmatpush3.msra.mxu0 %v4884_v60  ;;  %v4312_v30 = vand.u32 4294901760, %v1592_v29 }
 0x132   :  { %3114 = vmatpush3.msra.mxu1 %v3761_v5  ;;  %2998 = vmatprep.subr.mxu0 %v4877_v55  ;;  %v4887_v5 = vand.u32 4294901760, %v3759_v4  ;;  %v4889_v4 = vand.u32 4294901760, %v3787_v15  ;;  %v4892_v15 = vand.u32 4294901760, %v3827_v32  ;;  %v4898_v32 = vand.u32 4294901760, %v4882_v23 }
 0x133   :  { %3115 = vmatprep.subr.mxu1 %v4877_v55  ;;  %2999 = vmatpush3.msra.mxu0 %v4885_v61  ;;  %v4326_v37 = vsub.f32 %v1592_v29, %v4312_v30  ;;  %v1583_v29 = vld [vmem:[%s4807_s5 + $0x10] sm:$0xff] }
 0x134   :  { %3000 = vmatprep.mubr.msk.f32.mxu0 %vm3441_vm1, %v4877_v55  ;;  %3053 = vmatprep.mubr.msk.f32.mxu1 %vm3441_vm1, %v4877_v55 }
 0x135   :  { %3116 = vmatpush3.msra.mxu1 %v3775_v10  ;;  %3001 = vmatmul.mubr.f32.vlgmr.msra.gmra.mxu0 %v3985_v56  ;;  %v4891_v10 = vand.u32 4294901760, %v3814_v26  ;;  %v4896_v26 = vand.u32 4294901760, %v4879_v11 }
 0x136   :  { %3054 = vmatmul.mubr.f32.gmra.mxu1 %v856_v54  ;;  %3062 = vmatprep.subr.mxu0 %v4877_v55  ;;  %v4322_v54 = vand.u32 4294901760, %v1591_v17 }
 0x137   :  { %3117 = vmatprep.subr.mxu1 %v4877_v55  ;;  %3063 = vmatpush3.msra.mxu0 %v4886_v1 }
 0x138   :  { %3118 = vmatpush3.msra.mxu1 %v3790_v16  ;;  %3064 = vmatprep.subr.mxu0 %v4877_v55  ;;  %v4893_v16 = vand.u32 4294901760, %v3845_v38  ;;  %v4900_v38 = vand.u32 4294901760, %v4884_v60  ;;  %v4336_v42 = vsub.f32 %v1591_v17, %v4322_v54 }
 0x139   :  { %3119 = vmatprep.subr.mxu1 %v4877_v55  ;;  %3003 = vmatprep.mubr.msk.f32.mxu0 %vm3441_vm1, %v4877_v55 }
 0x13a   :  { %3056 = vmatprep.mubr.msk.f32.mxu1 %vm3441_vm1, %v4877_v55  ;;  %3065 = vmatpush3.msra.mxu0 %v4887_v5  ;;  %v4855_v13 = vand.u32 4294901760, %v4336_v42 }
 0x13b   :  { %3120 = vmatpush3.msra.mxu1 %v3800_v21  ;;  %3004 = vmatmul.mubr.f32.gmra.mxu0 %v4000_v12  ;;  %v4894_v21 = vand.u32 4294901760, %v3860_v45  ;;  %v1596_v45 = vld [vmem:[%s4807_s5 + $0x78] sm:$0xff] }
 0x13c   :  { %3057 = vmatmul.mubr.f32.gmra.mxu1 %v866_v31  ;;  %3066 = vmatprep.subr.mxu0 %v4877_v55  ;;  %v4856_v31 = vand.u32 4294901760, %v4326_v37 }
 0x13d   :  { %3121 = vmatprep.subr.mxu1 %v4877_v55  ;;  %3067 = vmatpush3.msra.mxu0 %v4888_v63 }
 0x13e   :  { %3122 = vmatpush3.msra.mxu1 %v3816_v27  ;;  %3068 = vmatprep.subr.mxu0 %v4877_v55  ;;  %v4897_v27 = vand.u32 4294901760, %v4881_v20  ;;  %v1767_v47 = vsub.f32 %v4326_v37, %v4856_v31  ;;  %v4369_v20 = vand.u32 4294901760, %v1588_v62 }
 0x13f   :  { %3123 = vmatprep.subr.mxu1 %v4877_v55  ;;  %3006 = vmatprep.mubr.msk.f32.mxu0 %vm3441_vm1, %v4877_v55 }
 0x140   :  { %3059 = vmatprep.mubr.msk.f32.mxu1 %vm3441_vm1, %v4877_v55  ;;  %3069 = vmatpush3.msra.mxu0 %v4889_v4  ;;  %v1768_v23 = vand.u32 4294901760, %v1767_v47  ;;  %v4382_v5 = vsub.f32 %v1588_v62, %v4369_v20  ;;  %v1586_v4 = vld [vmem:[%s4807_s5 + $0x28] sm:$0xff]  ;;  %v1581_v62 = vld [vmem:[%s4807_s5] sm:$0xff] }
 0x141   :  { %3124 = vmatpush3.msra.mxu1 %v3829_v33  ;;  %3007 = vmatmul.mubr.f32.gmra.mxu0 %v4013_v0  ;;  %v4899_v33 = vand.u32 4294901760, %v4883_v24  ;;  %v1587_v24 = vld [vmem:[%s4807_s5 + $0x30] sm:$0xff] }
 0x142   :  { %3060 = vmatmul.mubr.f32.gmra.mxu1 %v876_v25  ;;  %3070 = vmatprep.subr.mxu0 %v4877_v55  ;;  %v4385_v63 = vand.u32 4294901760, %v1587_v24 }
 0x143   :  { %3125 = vmatprep.subr.mxu1 %v4877_v55  ;;  %3071 = vmatpush3.msra.mxu0 %v4890_v9 }
 0x144   :  { %3126 = vmatpush3.msra.mxu1 %v3847_v39  ;;  %3072 = vmatprep.subr.mxu0 %v4877_v55  ;;  %v4901_v39 = vand.u32 4294901760, %v4885_v61 }
 0x145   :  { %3127 = vmatprep.subr.mxu1 %v4877_v55  ;;  %3009 = vmatprep.mubr.msk.f32.mxu0 %vm3441_vm1, %v4877_v55 }
 0x146   :  { %3073 = vmatpush3.msra.mxu0 %v4891_v10  ;;  %3128 = vmatpush3.msra.mxu1 %v3863_v46  ;;  %v4264_v46 = vand.u32 4294901760, %v1596_v45 }
 0x147   :  { %3010 = vmatmul.mubr.f32.gmra.mxu0 %v4029_v34  ;;  %3074 = vmatprep.subr.mxu0 %v4877_v55 }
 0x148   :  { %3129 = vmatprep.subr.mxu1 %v4877_v55  ;;  %3075 = vmatpush3.msra.mxu0 %v4892_v15  ;;  %v4270_v52 = vsub.f32 %v1596_v45, %v4264_v46  ;;  %v4852_v15 = vand.u32 4294901760, %v4382_v5 }
 0x149   :  { %3130 = vmatpush3.msra.mxu1 %v3874_v51  ;;  %3076 = vmatprep.subr.mxu0 %v4877_v55  ;;  %v1595_v51 = vld [vmem:[%s4807_s5 + $0x70] sm:$0xff] }
 0x14a   :  { %3131 = vmatprep.subr.mxu1 %v4877_v55  ;;  %3012 = vmatprep.mubr.msk.f32.mxu0 %vm3441_vm1, %v4877_v55 }
 0x14b   :  { %3077 = vmatpush3.msra.mxu0 %v4893_v16  ;;  %3132 = vmatpush3.msra.mxu1 %v3891_v57  ;;  %v4272_v57 = vand.u32 4294901760, %v1595_v51  ;;  %v4396_v16 = vand.u32 4294901760, %v1586_v4 }
 0x14c   :  { %3013 = vmatmul.mubr.f32.gmra.mxu0 %v4047_v59  ;;  %3078 = vmatprep.subr.mxu0 %v4877_v55  ;;  %v1589_v59 = vld [vmem:[%s4807_s5 + $0x40] sm:$0xff] }
 0x14d   :  { %3133 = vmatprep.subr.mxu1 %v4877_v55  ;;  %3079 = vmatpush3.msra.mxu0 %v4894_v21  ;;  %v4351_v35 = vand.u32 4294901760, %v1589_v59  ;;  %v4400_v21 = vsub.f32 %v1587_v24, %v4385_v63 }
 0x14e   :  { %3134 = vmatpush3.msra.mxu1 %v3904_v6  ;;  %3080 = vmatprep.subr.mxu0 %v4877_v55  ;;  %v1594_v6 = vld [vmem:[%s4807_s5 + $0x68] sm:$0xff] }
 0x14f   :  { %3135 = vmatprep.subr.mxu1 %v4877_v55  ;;  %3081 = vmatpush3.msra.mxu0 %v4895_v22  ;;  %v4283_v56 = vand.u32 4294901760, %v1594_v6  ;;  %v1585_v22 = vld [vmem:[%s4807_s5 + $0x20] sm:$0xff] }
 0x150   :  { %3136 = vmatpush3.msra.mxu1 %v3922_v18  ;;  %3082 = vmatprep.subr.mxu0 %v4877_v55  ;;  %v4860_v18 = vand.u32 4294901760, %v4270_v52 }
 0x151   :  { %3137 = vmatprep.subr.mxu1 %v4877_v55  ;;  %3083 = vmatpush3.msra.mxu0 %v4896_v26 }
 0x152   :  { %3138 = vmatpush3.msra.mxu1 %v4878_v48  ;;  %3084 = vmatprep.subr.mxu0 %v4877_v55  ;;  %v1739_v12 = vsub.f32 %v4270_v52, %v4860_v18  ;;  %v1774_v48 = vsub.f32 %v4336_v42, %v4855_v13 }
 0x153   :  { %3139 = vmatprep.subr.mxu1 %v4877_v55  ;;  %3085 = vmatpush3.msra.mxu0 %v4897_v27  ;;  %v1795_v27 = vsub.f32 %v4382_v5, %v4852_v15 }
 0x154   :  { %3140 = vmatpush3.msra.mxu1 %v4880_v28  ;;  %3141 = vmatprep.mubr.msk.f32.mxu1 %vm3441_vm1, %v4877_v55  ;;  %v1740_v36 = vand.u32 4294901760, %v1739_v12  ;;  %v4367_v28 = vsub.f32 %v1589_v59, %v4351_v35  ;;  %v1775_v60 = vand.u32 4294901760, %v1774_v48 }
 0x155   :  { %3086 = vmatprep.subr.mxu0 %v4877_v55  ;;  %3142 = vmatmul.mubr.f32.vlgmr.msra.gmra.mxu1 %v3982_v43  ;;  %v1796_v45 = vand.u32 4294901760, %v1795_v27 }
 0x156   :  { %3087 = vmatpush3.msra.mxu0 %v4898_v32  ;;  %3144 = vmatprep.mubr.msk.f32.mxu1 %vm3441_vm1, %v4877_v55  ;;  %v4853_v1 = vand.u32 4294901760, %v4367_v28  ;;  %v4411_v32 = vsub.f32 %v1586_v4, %v4396_v16 }
 0x157   :  { %3088 = vmatprep.subr.mxu0 %v4877_v55  ;;  %3094 = vmatprep.mubr.msk.f32.mxu0 %vm3441_vm1, %v4877_v55 }
 0x158   :  { %3089 = vmatpush3.msra.mxu0 %v4899_v33  ;;  %3203 = vmatprep.subr.mxu1 %v4877_v55  ;;  %v1788_v10 = vsub.f32 %v4367_v28, %v4853_v1  ;;  %v4413_v33 = vand.u32 4294901760, %v1585_v22 }
 0x159   :  { %3090 = vmatprep.subr.mxu0 %v4877_v55  ;;  %3145 = vmatmul.mubr.f32.gmra.mxu1 %v3992_v19 }
 0x15a   :  { %3091 = vmatpush3.msra.mxu0 %v4900_v38  ;;  %3147 = vmatprep.mubr.msk.f32.mxu1 %vm3441_vm1, %v4877_v55  ;;  %v1789_v26 = vand.u32 4294901760, %v1788_v10  ;;  %v4851_v38 = vand.u32 4294901760, %v4400_v21 }
 0x15b   :  { %3092 = vmatprep.subr.mxu0 %v4877_v55  ;;  %3204 = vmatpush3.msra.mxu1 %v1740_v36 }
 0x15c   :  { %3093 = vmatpush3.msra.mxu0 %v4901_v39  ;;  %3205 = vmatprep.subr.mxu1 %v4877_v55  ;;  %v1584_v39 = vld [vmem:[%s4807_s5 + $0x18] sm:$0xff]  ;;  %v1802_v12 = vsub.f32 %v4400_v21, %v4851_v38 }
 0x15d   :  { %3095 = vmatmul.mubr.f32.vlgmr.msra.gmra.mxu0 %v3982_v43  ;;  %3148 = vmatmul.mubr.f32.gmra.mxu1 %v4007_v41  ;;  %v4281_v43 = vsub.f32 %v1595_v51, %v4272_v57  ;;  %v4850_v51 = vand.u32 4294901760, %v4411_v32 }
 0x15e   :  { %3097 = vmatprep.mubr.msk.f32.mxu0 %vm3441_vm1, %v4877_v55  ;;  %3150 = vmatprep.mubr.msk.f32.mxu1 %vm3441_vm1, %v4877_v55 }
 0x15f   :  { %3156 = vmatprep.subr.mxu0 %v4877_v55  ;;  %v4859_v8 = vand.u32 4294901760, %v4281_v43  ;;  %v1809_v36 = vsub.f32 %v4411_v32, %v4850_v51 }
 0x160   :  { %3157 = vmatpush3.msra.mxu0 %v4264_v46 }
 0x161   :  { %3098 = vmatmul.mubr.f32.gmra.mxu0 %v3992_v19  ;;  %3151 = vmatmul.mubr.f32.gmra.mxu1 %v4021_v3  ;;  %v1593_v19 = vld [vmem:[%s4807_s5 + $0x60] sm:$0xff]  ;;  %v1746_v40 = vsub.f32 %v4281_v43, %v4859_v8 }
 0x162   :  { %3100 = vmatprep.mubr.msk.f32.mxu0 %vm3441_vm1, %v4877_v55  ;;  %3153 = vmatprep.mubr.msk.f32.mxu1 %vm3441_vm1, %v4877_v55  ;;  %v4297_v14 = vand.u32 4294901760, %v1593_v19 }
 0x163   :  { %3158 = vmatprep.subr.mxu0 %v4877_v55  ;;  %v1747_v58 = vand.u32 4294901760, %v1746_v40 }
 0x164   :  { %3159 = vmatpush3.msra.mxu0 %v4272_v57  ;;  %v4309_v50 = vsub.f32 %v1593_v19, %v4297_v14  ;;  %v4426_v19 = vand.u32 4294901760, %v1584_v39 }
 0x165   :  { %3101 = vmatmul.mubr.f32.gmra.mxu0 %v4007_v41  ;;  %3154 = vmatmul.mubr.f32.gmra.mxu1 %v4040_v53  ;;  %v4295_v41 = vsub.f32 %v1594_v6, %v4283_v56  ;;  %v4424_v6 = vsub.f32 %v1585_v22, %v4413_v33 }
 0x166   :  { %3103 = vmatprep.mubr.msk.f32.mxu0 %vm3441_vm1, %v4877_v55  ;;  %3235 = vmatprep.mubr.msk.f32.mxu1 %vm3441_vm1, %v4877_v55  ;;  %v4857_v49 = vand.u32 4294901760, %v4309_v50  ;;  %v4442_v17 = vsub.f32 %v1584_v39, %v4426_v19 }
 0x167   :  { %3160 = vmatprep.subr.mxu0 %v4877_v55  ;;  %v4858_v0 = vand.u32 4294901760, %v4295_v41  ;;  %3206 = vmatpush3.msra.mxu1 %v1747_v58  ;;  %v4849_v40 = vand.u32 4294901760, %v4424_v6  ;;  %v4444_v58 = vand.u32 4294901760, %v1583_v29 }
 0x168   :  { %3161 = vmatpush3.msra.mxu0 %v4283_v56  ;;  %v1760_v44 = vsub.f32 %v4309_v50, %v4857_v49  ;;  %3207 = vmatprep.subr.mxu1 %v4877_v55  ;;  %4902 = vst [vmem:[#allocation6_spill] sm:$0xff] %v4442_v17  ;;  %v4848_v59 = vand.u32 4294901760, %v4442_v17 }
 0x169   :  { %3104 = vmatmul.mubr.f32.gmra.mxu0 %v4021_v3  ;;  %3162 = vmatprep.subr.mxu0 %v4877_v55  ;;  %v1753_v3 = vsub.f32 %v4295_v41, %v4858_v0 }
 0x16a   :  { %3106 = vmatprep.mubr.msk.f32.mxu0 %vm3441_vm1, %v4877_v55  ;;  %3163 = vmatpush3.msra.mxu0 %v4297_v14  ;;  %v1761_v7 = vand.u32 4294901760, %v1760_v44  ;;  %v1816_v44 = vsub.f32 %v4424_v6, %v4849_v40 }
 0x16b   :  { %3164 = vmatprep.subr.mxu0 %v4877_v55  ;;  %v1754_v34 = vand.u32 4294901760, %v1753_v3  ;;  %v1803_v3 = vand.u32 4294901760, %v1802_v12 }
 0x16c   :  { %3165 = vmatpush3.msra.mxu0 %v4312_v30  ;;  %v1817_v48 = vand.u32 4294901760, %v1816_v44  ;;  %v2428_v44 = vld [vmem:[%s4808_s4] ss:$0 sm:$0xff] }
 0x16d   :  { %3107 = vmatmul.mubr.f32.gmra.mxu0 %v4040_v53  ;;  %v4338_v53 = vand.u32 4294901760, %v1590_v2  ;;  %3166 = vmatprep.subr.mxu0 %v4877_v55 }
 0x16e   :  { %3188 = vmatprep.mubr.msk.f32.mxu0 %vm3441_vm1, %v4877_v55  ;;  %3167 = vmatpush3.msra.mxu0 %v4322_v54 }
 0x16f   :  { %3208 = vmatpush3.msra.mxu1 %v1754_v34  ;;  %v4349_v25 = vsub.f32 %v1590_v2, %v4338_v53  ;;  %3168 = vmatprep.subr.mxu0 %v4877_v55  ;;  %v1582_v2 = vld [vmem:[%s4807_s5 + $0x8] sm:$0xff]  ;;  %v1810_v34 = vand.u32 4294901760, %v1809_v36 }
 0x170   :  { %3209 = vmatprep.subr.mxu1 %v4877_v55  ;;  %3169 = vmatpush3.msra.mxu0 %v4338_v53  ;;  %v4460_v47 = vand.u32 4294901760, %v1582_v2 }
 0x171   :  { %3210 = vmatpush3.msra.mxu1 %v1761_v7  ;;  %v4854_v11 = vand.u32 4294901760, %v4349_v25  ;;  %3170 = vmatprep.subr.mxu0 %v4877_v55  ;;  %v4457_v7 = vsub.f32 %v1583_v29, %v4444_v58 }
 0x172   :  { %3211 = vmatprep.subr.mxu1 %v4877_v55  ;;  %3171 = vmatpush3.msra.mxu0 %v4351_v35 }
 0x173   :  { %v1781_v61 = vsub.f32 %v4349_v25, %v4854_v11  ;;  %3172 = vmatprep.subr.mxu0 %v4877_v55  ;;  %3212 = vmatpush3.msra.mxu1 %v1768_v23  ;;  %4903 = vst [vmem:[#allocation2_spill] sm:$0xff] %v4457_v7  ;;  %v1823_v23 = vsub.f32 %v4442_v17, %v4848_v59  ;;  %v4847_v24 = vand.u32 4294901760, %v4457_v7 }
 0x174   :  { %3173 = vmatpush3.msra.mxu0 %v4369_v20  ;;  %3213 = vmatprep.subr.mxu1 %v4877_v55 }
 0x175   :  { %v1782_v9 = vand.u32 4294901760, %v1781_v61  ;;  %3174 = vmatprep.subr.mxu0 %v4877_v55  ;;  %3214 = vmatpush3.msra.mxu1 %v1775_v60  ;;  %v4471_v60 = vand.u32 4294901760, %v1581_v62  ;;  %v4475_v61 = vsub.f32 %v1582_v2, %v4460_v47  ;;  %v1824_v4 = vand.u32 4294901760, %v1823_v23 }
 0x176   :  { %3175 = vmatpush3.msra.mxu0 %v4385_v63  ;;  %3215 = vmatprep.subr.mxu1 %v4877_v55 }
 0x177   :  { %3176 = vmatprep.subr.mxu0 %v4877_v55  ;;  %3216 = vmatpush3.msra.mxu1 %v1782_v9  ;;  %4904 = vst [vmem:[#allocation7_spill] sm:$0xff] %v4475_v61  ;;  %v1830_v9 = vsub.f32 %v4457_v7, %v4847_v24  ;;  %v4483_v10 = vsub.f32 %v1581_v62, %v4471_v60  ;;  %v4846_v22 = vand.u32 4294901760, %v4475_v61 }
 0x178   :  { %3177 = vmatpush3.msra.mxu0 %v4396_v16  ;;  %3217 = vmatprep.subr.mxu1 %v4877_v55 }
 0x179   :  { %3178 = vmatprep.subr.mxu0 %v4877_v55  ;;  %3218 = vmatpush3.msra.mxu1 %v1789_v26  ;;  %4905 = vst [vmem:[#allocation3_spill] sm:$0xff] %v4483_v10  ;;  %v1831_v26 = vand.u32 4294901760, %v1830_v9  ;;  %v4845_v27 = vand.u32 4294901760, %v4483_v10  ;;  %v1837_v39 = vsub.f32 %v4475_v61, %v4846_v22 }
 0x17a   :  { %3179 = vmatpush3.msra.mxu0 %v4413_v33  ;;  %3219 = vmatprep.subr.mxu1 %v4877_v55 }
 0x17b   :  { %3180 = vmatprep.subr.mxu0 %v4877_v55  ;;  %3220 = vmatpush3.msra.mxu1 %v1796_v45  ;;  %v1844_v45 = vsub.f32 %v4483_v10, %v4845_v27  ;;  %v1838_v12 = vand.u32 4294901760, %v1837_v39 }
 0x17c   :  { %3181 = vmatpush3.msra.mxu0 %v4426_v19  ;;  %3221 = vmatprep.subr.mxu1 %v4877_v55 }
 0x17d   :  { %3182 = vmatprep.subr.mxu0 %v4877_v55  ;;  %3222 = vmatpush3.msra.mxu1 %v1803_v3  ;;  %v1845_v29 = vand.u32 4294901760, %v1844_v45 }
 0x17e   :  { %3183 = vmatpush3.msra.mxu0 %v4444_v58  ;;  %3223 = vmatprep.subr.mxu1 %v4877_v55 }
 0x17f   :  { %3184 = vmatprep.subr.mxu0 %v4877_v55  ;;  %3224 = vmatpush3.msra.mxu1 %v1810_v34 }
 0x180   :  { %3185 = vmatpush3.msra.mxu0 %v4460_v47  ;;  %3225 = vmatprep.subr.mxu1 %v4877_v55 }
 0x181   :  { %3186 = vmatprep.subr.mxu0 %v4877_v55  ;;  %3226 = vmatpush3.msra.mxu1 %v1817_v48 }
 0x182   :  { %3187 = vmatpush3.msra.mxu0 %v4471_v60  ;;  %3227 = vmatprep.subr.mxu1 %v4877_v55 }
 0x183   :  { %3250 = vmatprep.subr.mxu0 %v4877_v55  ;;  %3228 = vmatpush3.msra.mxu1 %v1824_v4 }
 0x184   :  { %3229 = vmatprep.subr.mxu1 %v4877_v55 }
 0x185   :  { %3230 = vmatpush3.msra.mxu1 %v1831_v26 }
 0x186   :  { %3231 = vmatprep.subr.mxu1 %v4877_v55 }
 0x187   :  { %3232 = vmatpush3.msra.mxu1 %v1838_v12 }
 0x188   :  { %3233 = vmatprep.subr.mxu1 %v4877_v55 }
 0x189   :  { %3234 = vmatpush3.msra.mxu1 %v1845_v29 }
 0x18a   :  { %3297 = vmatprep.subr.mxu1 %v4877_v55 }
 0x1c4   :  { %v1031_v36 = vpop.f32.mrf.mxu1 }
 0x1c6   :  { %v2955_v3 = vpop.f32.mrf.mxu1 }
 0x1c8   :  { %v1037_v2 = vpop.f32.mrf.mxu1 }
 0x1ca   :  { %v2958_v34 = vpop.f32.mrf.mxu1 }
 0x1cc   :  { %v840_v62 = vpop.f32.mrf.mxu0 }
 0x1cd   :  { %v841_v48 = vadd.f32 %v2428_v44, %v840_v62  ;;  %v1043_v23 = vpop.f32.mrf.mxu1 }
 0x1ce   :  { %v2908_v4 = vpop.f32.mrf.mxu0 }
 0x1cf   :  { %v2961_v9 = vpop.f32.mrf.mxu1  ;;  %v1032_v26 = vadd.f32 %v1031_v36, %v841_v48 }
 0x1d2   :  { %v850_v39 = vpop.f32.mrf.mxu0 }
 0x1d3   :  { %v851_v45 = vadd.f32 %v2428_v44, %v850_v39  ;;  %v1049_v12 = vpop.f32.mrf.mxu1 }
 0x1d4   :  { %v2911_v29 = vpop.f32.mrf.mxu0 }
 0x1d5   :  { %v2964_v27 = vpop.f32.mrf.mxu1  ;;  %v1038_v22 = vadd.f32 %v1037_v2, %v851_v45 }
 0x1d8   :  { %v860_v24 = vpop.f32.mrf.mxu0 }
 0x1d9   :  { %v861_v3 = vadd.f32 %v2428_v44, %v860_v24  ;;  %v1055_v59 = vpop.f32.mrf.mxu1 }
 0x1da   :  { %v2914_v34 = vpop.f32.mrf.mxu0 }
 0x1db   :  { %v2967_v40 = vpop.f32.mrf.mxu1  ;;  %v1044_v51 = vadd.f32 %v1043_v23, %v861_v3 }
 0x1de   :  { %v870_v38 = vpop.f32.mrf.mxu0 }
 0x1df   :  { %v871_v15 = vadd.f32 %v2428_v44, %v870_v38 }
 0x1e0   :  { %v2917_v1 = vpop.f32.mrf.mxu0 }
 0x1e1   :  { %v1050_v62 = vadd.f32 %v1049_v12, %v871_v15 }
 0x1e3   :  { %v880_v11 = vpop.f32.mrf.mxu0 }
 0x1e4   :  { %v881_v4 = vadd.f32 %v2428_v44, %v880_v11 }
 0x1e5   :  { %v2920_v9 = vpop.f32.mrf.mxu0 }
 0x1e6   :  { %v1056_v36 = vadd.f32 %v1055_v59, %v881_v4 }
 0x1eb   :  { %v1276_v48 = vpop.f32.mrf.mxu1 }
 0x1ed   :  { %v3049_v39 = vpop.f32.mrf.mxu1 }
 0x1f0   :  { %v1284_v13 = vpop.f32.mrf.mxu1 }
 0x1f2   :  { %v3052_v29 = vpop.f32.mrf.mxu1 }
 0x1f5   :  { %v1159_v27 = vpop.f32.mrf.mxu0 }
 0x1f6   :  { %v1292_v2 = vpop.f32.mrf.mxu1  ;;  %v1160_v39 = vadd.f32 %v1159_v27, %v1032_v26 }
 0x1f7   :  { %v3002_v45 = vpop.f32.mrf.mxu0 }
 0x1f8   :  { %v3055_v24 = vpop.f32.mrf.mxu1 }
 0x1f9   :  { %v1277_v24 = vadd.f32 %v1276_v48, %v1160_v39 }
 0x1fb   :  { %v1166_v31 = vpop.f32.mrf.mxu0 }
 0x1fc   :  { %v1300_v34 = vpop.f32.mrf.mxu1  ;;  %v1167_v45 = vadd.f32 %v1166_v31, %v1038_v22 }
 0x1fd   :  { %v3005_v40 = vpop.f32.mrf.mxu0 }
 0x1fe   :  { %v3058_v23 = vpop.f32.mrf.mxu1 }
 0x201   :  { %v1173_v3 = vpop.f32.mrf.mxu0 }
 0x202   :  { %v4504_v38 = vpop.f32.mrf.mxu1  ;;  %v1174_v10 = vadd.f32 %v1173_v3, %v1044_v51 }
 0x203   :  { %v3008_v1 = vpop.f32.mrf.mxu0 }
 0x204   :  { %v3061_v15 = vpop.f32.mrf.mxu1  ;;  %v1285_v1 = vadd.f32 %v1284_v13, %v1167_v45  ;;  %v1293_v31 = vadd.f32 %v1292_v2, %v1174_v10 }
 0x207   :  { %v1180_v11 = vpop.f32.mrf.mxu0 }
 0x208   :  { %v1181_v17 = vadd.f32 %v1180_v11, %v1050_v62 }
 0x209   :  { %v3011_v44 = vpop.f32.mrf.mxu0 }
 0x20a   :  { %v1301_v62 = vadd.f32 %v1300_v34, %v1181_v17 }
 0x20c   :  { %v1187_v59 = vpop.f32.mrf.mxu0 }
 0x20d   :  { %v1188_v11 = vadd.f32 %v1187_v59, %v1056_v36 }
 0x20e   :  { %v3014_v12 = vpop.f32.mrf.mxu0 }
 0x215   :  { %v1538_v4 = vpop.f32.mrf.mxu1 }
 0x217   :  { %v3143_v9 = vpop.f32.mrf.mxu1 }
 0x219   :  { %v1544_v29 = vpop.f32.mrf.mxu1 }
 0x21b   :  { %v3146_v49 = vpop.f32.mrf.mxu1 }
 0x21d   :  { %v1427_v0 = vpop.f32.mrf.mxu0  ;;  %v1550_v8 = vpop.f32.mrf.mxu1 }
 0x21e   :  { %v1428_v40 = vadd.f32 %v1427_v0, %v1277_v24 }
 0x21f   :  { %v3096_v23 = vpop.f32.mrf.mxu0  ;;  %v3149_v18 = vpop.f32.mrf.mxu1 }
 0x220   :  { %v1539_v61 = vadd.f32 %v1538_v4, %v1428_v40  ;;  %v1309_v40 = vadd.f32 %v4504_v38, %v1188_v11 }
 0x221   :  { %v1433_v15 = vpop.f32.mrf.mxu0  ;;  %v1556_v7 = vpop.f32.mrf.mxu1 }
 0x222   :  { %vm1566_vm7 = vcmp.gt.f32.partialorder %v1539_v61, 0.0  ;;  %v1571_v44 = vmul.f32 0.5, %v1539_v61  ;;  %v1434_v12 = vadd.f32 %v1433_v15, %v1285_v1 }
 0x223   :  { %v3099_v9 = vpop.f32.mrf.mxu0  ;;  %v3152_v26 = vpop.f32.mrf.mxu1 }
 0x224   :  { %v1576_v27 = vsel %vm1566_vm7, %v1539_v61, %v1571_v44  ;;  %v1545_v49 = vadd.f32 %v1544_v29, %v1434_v12 }
 0x225   :  { %v4506_v22 = vand.u32 4294901760, %v1576_v27  ;;  %v1439_v48 = vpop.f32.mrf.mxu0  ;;  %v1562_v0 = vpop.f32.mrf.mxu1 }
 0x226   :  { %vm1567_vm8 = vcmp.gt.f32.partialorder %v1545_v49, 0.0  ;;  %v1572_v18 = vmul.f32 0.5, %v1545_v49  ;;  %v1440_v51 = vadd.f32 %v1439_v48, %v1293_v31 }
 0x227   :  { %v4509_v13 = vsub.f32 %v1576_v27, %v4506_v22  ;;  %v3102_v3 = vpop.f32.mrf.mxu0  ;;  %v3155_v4 = vpop.f32.mrf.mxu1  ;;  %3236 = vmatmul.mubr.f32.vlgmr.msra.gmra.mxu1 %v4506_v22 }
 0x228   :  { %v1577_v39 = vsel %vm1567_vm8, %v1545_v49, %v1572_v18  ;;  %v1551_v61 = vadd.f32 %v1550_v8, %v1440_v51  ;;  %3298 = vmatpush3.msra.mxu1 %v4264_v46  ;;  %3238 = vmatprep.mubr.msk.f32.mxu1 %vm3441_vm1, %v4877_v55 }
 0x229   :  { %v1687_v10 = vand.u32 4294901760, %v4509_v13  ;;  %3299 = vmatprep.subr.mxu1 %v4877_v55  ;;  %v1445_v2 = vpop.f32.mrf.mxu0  ;;  %v4517_v29 = vand.u32 4294901760, %v1577_v39 }
 0x22a   :  { %vm1568_vm9 = vcmp.gt.f32.partialorder %v1551_v61, 0.0  ;;  %v1573_v45 = vmul.f32 0.5, %v1551_v61  ;;  %v1446_v24 = vadd.f32 %v1445_v2, %v1301_v62  ;;  %3300 = vmatpush3.msra.mxu1 %v4272_v57 }
 0x22b   :  { %3301 = vmatprep.subr.mxu1 %v4877_v55  ;;  %v3105_v8 = vpop.f32.mrf.mxu0  ;;  %3239 = vmatmul.mubr.f32.gmra.mxu1 %v4517_v29  ;;  %v1688_v17 = vsub.f32 %v4509_v13, %v1687_v10  ;;  %v4526_v36 = vsub.f32 %v1577_v39, %v4517_v29 }
 0x22c   :  { %v1578_v34 = vsel %vm1568_vm9, %v1551_v61, %v1573_v45  ;;  %v1557_v59 = vadd.f32 %v1556_v7, %v1446_v24  ;;  %3302 = vmatpush3.msra.mxu1 %v4283_v56  ;;  %3241 = vmatprep.mubr.msk.f32.mxu1 %vm3441_vm1, %v4877_v55 }
 0x22d   :  { %3303 = vmatprep.subr.mxu1 %v4877_v55  ;;  %v1451_v23 = vpop.f32.mrf.mxu0  ;;  %v1689_v1 = vand.u32 4294901760, %v1688_v17  ;;  %v4533_v15 = vand.u32 4294901760, %v1578_v34  ;;  %v1697_v44 = vand.u32 4294901760, %v4526_v36 }
 0x22e   :  { %vm1569_vm10 = vcmp.gt.f32.partialorder %v1557_v59, 0.0  ;;  %v1574_v12 = vmul.f32 0.5, %v1557_v59  ;;  %v1452_v9 = vadd.f32 %v1451_v23, %v1309_v40  ;;  %3304 = vmatpush3.msra.mxu1 %v4297_v14 }
 0x22f   :  { %3305 = vmatprep.subr.mxu1 %v4877_v55  ;;  %v3108_v7 = vpop.f32.mrf.mxu0  ;;  %3189 = vmatmul.mubr.f32.vlgmr.msra.gmra.mxu0 %v1689_v1  ;;  %v1698_v38 = vsub.f32 %v4526_v36, %v1697_v44  ;;  %v4542_v26 = vsub.f32 %v1578_v34, %v4533_v15  ;;  %v4906_v34 = vld [vmem:[#allocation6_spill] sm:$0xff] }
 0x230   :  { %v1579_v27 = vsel %vm1569_vm10, %v1557_v59, %v1574_v12  ;;  %v1563_v49 = vadd.f32 %v1562_v0, %v1452_v9  ;;  %3242 = vmatmul.mubr.f32.gmra.mxu1 %v4533_v15  ;;  %3251 = vmatpush3.msra.mxu0 %v4270_v52  ;;  %v4907_v59 = vld [vmem:[#allocation2_spill] sm:$0xff] }
 0x231   :  { %3306 = vmatpush3.msra.mxu1 %v4312_v30  ;;  %3252 = vmatprep.subr.mxu0 %v4877_v55  ;;  %v1699_v31 = vand.u32 4294901760, %v1698_v38  ;;  %v4548_v48 = vand.u32 4294901760, %v1579_v27  ;;  %v1707_v18 = vand.u32 4294901760, %v4542_v26 }
 0x232   :  { %vm1570_vm11 = vcmp.gt.f32.partialorder %v1563_v49, 0.0  ;;  %v1575_v51 = vmul.f32 0.5, %v1563_v49  ;;  %3307 = vmatprep.subr.mxu1 %v4877_v55  ;;  %3253 = vmatpush3.msra.mxu0 %v4281_v43 }
 0x233   :  { %3308 = vmatpush3.msra.mxu1 %v4322_v54  ;;  %3191 = vmatprep.mubr.msk.f32.mxu0 %vm3441_vm1, %v4877_v55  ;;  %v1708_v0 = vsub.f32 %v4542_v26, %v1707_v18  ;;  %v4560_v3 = vsub.f32 %v1579_v27, %v4548_v48 }
 0x234   :  { %v1580_v4 = vsel %vm1570_vm11, %v1563_v49, %v1575_v51  ;;  %3244 = vmatprep.mubr.msk.f32.mxu1 %vm3441_vm1, %v4877_v55  ;;  %3254 = vmatprep.subr.mxu0 %v4877_v55 }
 0x235   :  { %3309 = vmatprep.subr.mxu1 %v4877_v55  ;;  %3192 = vmatmul.mubr.f32.gmra.mxu0 %v1699_v31  ;;  %v4566_v62 = vand.u32 4294901760, %v1580_v4  ;;  %v1717_v11 = vand.u32 4294901760, %v4560_v3  ;;  %v1709_v39 = vand.u32 4294901760, %v1708_v0 }
 0x236   :  { %3245 = vmatmul.mubr.f32.gmra.mxu1 %v4548_v48  ;;  %3255 = vmatpush3.msra.mxu0 %v4295_v41 }
 0x237   :  { %3310 = vmatpush3.msra.mxu1 %v4338_v53  ;;  %3256 = vmatprep.subr.mxu0 %v4877_v55  ;;  %v4574_v61 = vsub.f32 %v1580_v4, %v4566_v62  ;;  %v1718_v2 = vsub.f32 %v4560_v3, %v1717_v11 }
 0x238   :  { %3311 = vmatprep.subr.mxu1 %v4877_v55  ;;  %3257 = vmatpush3.msra.mxu0 %v4309_v50 }
 0x239   :  { %3312 = vmatpush3.msra.mxu1 %v4351_v35  ;;  %3194 = vmatprep.mubr.msk.f32.mxu0 %vm3441_vm1, %v4877_v55  ;;  %v1727_v45 = vand.u32 4294901760, %v4574_v61  ;;  %v1719_v24 = vand.u32 4294901760, %v1718_v2 }
 0x23a   :  { %3247 = vmatprep.mubr.msk.f32.mxu1 %vm3441_vm1, %v4877_v55  ;;  %3258 = vmatprep.subr.mxu0 %v4877_v55 }
 0x23b   :  { %3313 = vmatprep.subr.mxu1 %v4877_v55  ;;  %3195 = vmatmul.mubr.f32.gmra.mxu0 %v1709_v39  ;;  %v1728_v8 = vsub.f32 %v4574_v61, %v1727_v45 }
 0x23c   :  { %3248 = vmatmul.mubr.f32.gmra.mxu1 %v4566_v62  ;;  %3259 = vmatpush3.msra.mxu0 %v4326_v37 }
 0x23d   :  { %3314 = vmatpush3.msra.mxu1 %v4369_v20  ;;  %3260 = vmatprep.subr.mxu0 %v4877_v55  ;;  %v1729_v17 = vand.u32 4294901760, %v1728_v8 }
 0x23e   :  { %3315 = vmatprep.subr.mxu1 %v4877_v55  ;;  %3261 = vmatpush3.msra.mxu0 %v4336_v42 }
 0x23f   :  { %3316 = vmatpush3.msra.mxu1 %v4385_v63  ;;  %3197 = vmatprep.mubr.msk.f32.mxu0 %vm3441_vm1, %v4877_v55 }
 0x240   :  { %3262 = vmatprep.subr.mxu0 %v4877_v55  ;;  %3317 = vmatprep.subr.mxu1 %v4877_v55 }
 0x241   :  { %3198 = vmatmul.mubr.f32.gmra.mxu0 %v1719_v24  ;;  %3318 = vmatpush3.msra.mxu1 %v4396_v16 }
 0x242   :  { %3263 = vmatpush3.msra.mxu0 %v4349_v25  ;;  %3319 = vmatprep.subr.mxu1 %v4877_v55 }
 0x243   :  { %3264 = vmatprep.subr.mxu0 %v4877_v55  ;;  %3320 = vmatpush3.msra.mxu1 %v4413_v33 }
 0x244   :  { %3265 = vmatpush3.msra.mxu0 %v4367_v28  ;;  %3200 = vmatprep.mubr.msk.f32.mxu0 %vm3441_vm1, %v4877_v55 }
 0x245   :  { %3266 = vmatprep.subr.mxu0 %v4877_v55  ;;  %3321 = vmatprep.subr.mxu1 %v4877_v55 }
 0x246   :  { %3201 = vmatmul.mubr.f32.gmra.mxu0 %v1729_v17  ;;  %3322 = vmatpush3.msra.mxu1 %v4426_v19 }
 0x247   :  { %3267 = vmatpush3.msra.mxu0 %v4382_v5  ;;  %3323 = vmatprep.subr.mxu1 %v4877_v55 }
 0x248   :  { %3268 = vmatprep.subr.mxu0 %v4877_v55  ;;  %3324 = vmatpush3.msra.mxu1 %v4444_v58 }
 0x249   :  { %3269 = vmatpush3.msra.mxu0 %v4400_v21  ;;  %3325 = vmatprep.subr.mxu1 %v4877_v55 }
 0x24a   :  { %3270 = vmatprep.subr.mxu0 %v4877_v55  ;;  %3326 = vmatpush3.msra.mxu1 %v4460_v47 }
 0x24b   :  { %3271 = vmatpush3.msra.mxu0 %v4411_v32  ;;  %3327 = vmatprep.subr.mxu1 %v4877_v55 }
 0x24c   :  { %3272 = vmatprep.subr.mxu0 %v4877_v55  ;;  %3328 = vmatpush3.msra.mxu1 %v4471_v60 }
 0x24d   :  { %3273 = vmatpush3.msra.mxu0 %v4424_v6  ;;  %3329 = vmatprep.mubr.msk.f32.mxu1 %vm3441_vm1, %v4877_v55 }
 0x24e   :  { %3274 = vmatprep.subr.mxu0 %v4877_v55  ;;  %3330 = vmatmul.mubr.f32.vlgmr.msra.gmra.mxu1 %v1687_v10  ;;  %v4908_v10 = vld [vmem:[#allocation7_spill] sm:$0xff] }
 0x24f   :  { %3391 = vmatprep.subr.mxu1 %v4877_v55  ;;  %3275 = vmatpush3.msra.mxu0 %v4906_v34 }
 0x250   :  { %3392 = vmatpush3.msra.mxu1 %v4264_v46  ;;  %3276 = vmatprep.subr.mxu0 %v4877_v55  ;;  %v4909_v46 = vld [vmem:[#allocation3_spill] sm:$0xff] }
 0x251   :  { %3393 = vmatprep.subr.mxu1 %v4877_v55  ;;  %3277 = vmatpush3.msra.mxu0 %v4907_v59 }
 0x252   :  { %3332 = vmatprep.mubr.msk.f32.mxu1 %vm3441_vm1, %v4877_v55  ;;  %3394 = vmatpush3.msra.mxu1 %v4272_v57  ;;  %v4910_v57 = vand.u32 4294901760, %v4270_v52  ;;  %v4912_v52 = vand.u32 4294901760, %v4295_v41  ;;  %v4914_v41 = vand.u32 4294901760, %v4326_v37  ;;  %v4919_v37 = vand.u32 4294901760, %v4400_v21 }
 0x253   :  { %3278 = vmatprep.subr.mxu0 %v4877_v55  ;;  %3333 = vmatmul.mubr.f32.gmra.mxu1 %v1697_v44 }
 0x254   :  { %3395 = vmatprep.subr.mxu1 %v4877_v55  ;;  %3279 = vmatpush3.msra.mxu0 %v4908_v10 }
 0x255   :  { %3396 = vmatpush3.msra.mxu1 %v4283_v56  ;;  %3280 = vmatprep.subr.mxu0 %v4877_v55  ;;  %v4911_v56 = vand.u32 4294901760, %v4281_v43  ;;  %v4913_v43 = vand.u32 4294901760, %v4309_v50  ;;  %v4916_v50 = vand.u32 4294901760, %v4349_v25  ;;  %v4922_v25 = vand.u32 4294901760, %v4906_v34 }
 0x256   :  { %3397 = vmatprep.subr.mxu1 %v4877_v55  ;;  %3281 = vmatpush3.msra.mxu0 %v4909_v46 }
 0x257   :  { %3282 = vmatprep.mubr.msk.f32.mxu0 %vm3441_vm1, %v4877_v55  ;;  %3335 = vmatprep.mubr.msk.f32.mxu1 %vm3441_vm1, %v4877_v55 }
 0x258   :  { %3398 = vmatpush3.msra.mxu1 %v4297_v14  ;;  %3283 = vmatmul.mubr.f32.vlgmr.msra.gmra.mxu0 %v4509_v13  ;;  %v4915_v14 = vand.u32 4294901760, %v4336_v42  ;;  %v4920_v42 = vand.u32 4294901760, %v4411_v32  ;;  %v2429_v32 = vld [vmem:[%s4809_s6] ss:$0 sm:$0xff] }
 0x259   :  { %3336 = vmatmul.mubr.f32.gmra.mxu1 %v1707_v18  ;;  %3344 = vmatprep.subr.mxu0 %v4877_v55 }
 0x25a   :  { %3399 = vmatprep.subr.mxu1 %v4877_v55  ;;  %3345 = vmatpush3.msra.mxu0 %v4910_v57 }
 0x25b   :  { %3400 = vmatpush3.msra.mxu1 %v4312_v30  ;;  %3346 = vmatprep.subr.mxu0 %v4877_v55  ;;  %v4917_v30 = vand.u32 4294901760, %v4367_v28  ;;  %v4924_v28 = vand.u32 4294901760, %v4908_v10 }
 0x25c   :  { %3401 = vmatprep.subr.mxu1 %v4877_v55  ;;  %3285 = vmatprep.mubr.msk.f32.mxu0 %vm3441_vm1, %v4877_v55 }
 0x25d   :  { %3338 = vmatprep.mubr.msk.f32.mxu1 %vm3441_vm1, %v4877_v55  ;;  %3347 = vmatpush3.msra.mxu0 %v4911_v56 }
 0x25e   :  { %3402 = vmatpush3.msra.mxu1 %v4322_v54  ;;  %3286 = vmatmul.mubr.f32.gmra.mxu0 %v4526_v36  ;;  %v4918_v54 = vand.u32 4294901760, %v4382_v5 }
 0x25f   :  { %3339 = vmatmul.mubr.f32.gmra.mxu1 %v1717_v11  ;;  %3348 = vmatprep.subr.mxu0 %v4877_v55 }
 0x260   :  { %3403 = vmatprep.subr.mxu1 %v4877_v55  ;;  %3349 = vmatpush3.msra.mxu0 %v4912_v52 }
 0x261   :  { %3404 = vmatpush3.msra.mxu1 %v4338_v53  ;;  %3350 = vmatprep.subr.mxu0 %v4877_v55  ;;  %v4921_v53 = vand.u32 4294901760, %v4424_v6 }
 0x262   :  { %3405 = vmatprep.subr.mxu1 %v4877_v55  ;;  %3288 = vmatprep.mubr.msk.f32.mxu0 %vm3441_vm1, %v4877_v55 }
 0x263   :  { %3341 = vmatprep.mubr.msk.f32.mxu1 %vm3441_vm1, %v4877_v55  ;;  %3351 = vmatpush3.msra.mxu0 %v4913_v43 }
 0x264   :  { %3406 = vmatpush3.msra.mxu1 %v4351_v35  ;;  %3289 = vmatmul.mubr.f32.gmra.mxu0 %v4542_v26  ;;  %v4923_v35 = vand.u32 4294901760, %v4907_v59 }
 0x265   :  { %3342 = vmatmul.mubr.f32.gmra.mxu1 %v1727_v45  ;;  %3352 = vmatprep.subr.mxu0 %v4877_v55 }
 0x266   :  { %3407 = vmatprep.subr.mxu1 %v4877_v55  ;;  %3353 = vmatpush3.msra.mxu0 %v4914_v41 }
 0x267   :  { %3408 = vmatpush3.msra.mxu1 %v4369_v20  ;;  %3354 = vmatprep.subr.mxu0 %v4877_v55  ;;  %v4925_v20 = vand.u32 4294901760, %v4909_v46 }
 0x268   :  { %3409 = vmatprep.subr.mxu1 %v4877_v55  ;;  %3291 = vmatprep.mubr.msk.f32.mxu0 %vm3441_vm1, %v4877_v55 }
 0x269   :  { %3355 = vmatpush3.msra.mxu0 %v4915_v14  ;;  %3410 = vmatpush3.msra.mxu1 %v4385_v63 }
 0x26a   :  { %3292 = vmatmul.mubr.f32.gmra.mxu0 %v4560_v3  ;;  %3356 = vmatprep.subr.mxu0 %v4877_v55 }
 0x26b   :  { %3411 = vmatprep.subr.mxu1 %v4877_v55  ;;  %3357 = vmatpush3.msra.mxu0 %v4916_v50 }
 0x26c   :  { %3412 = vmatpush3.msra.mxu1 %v4396_v16  ;;  %3358 = vmatprep.subr.mxu0 %v4877_v55 }
 0x26d   :  { %3413 = vmatprep.subr.mxu1 %v4877_v55  ;;  %3294 = vmatprep.mubr.msk.f32.mxu0 %vm3441_vm1, %v4877_v55 }
 0x26e   :  { %3359 = vmatpush3.msra.mxu0 %v4917_v30  ;;  %3414 = vmatpush3.msra.mxu1 %v4413_v33 }
 0x26f   :  { %3295 = vmatmul.mubr.f32.gmra.mxu0 %v4574_v61  ;;  %3360 = vmatprep.subr.mxu0 %v4877_v55 }
 0x270   :  { %3415 = vmatprep.subr.mxu1 %v4877_v55  ;;  %3361 = vmatpush3.msra.mxu0 %v4918_v54 }
 0x271   :  { %3416 = vmatpush3.msra.mxu1 %v4426_v19  ;;  %3362 = vmatprep.subr.mxu0 %v4877_v55 }
 0x272   :  { %3417 = vmatprep.subr.mxu1 %v4877_v55  ;;  %3363 = vmatpush3.msra.mxu0 %v4919_v37 }
 0x273   :  { %3418 = vmatpush3.msra.mxu1 %v4444_v58  ;;  %3364 = vmatprep.subr.mxu0 %v4877_v55 }
 0x274   :  { %3419 = vmatprep.subr.mxu1 %v4877_v55  ;;  %3365 = vmatpush3.msra.mxu0 %v4920_v42 }
 0x275   :  { %3420 = vmatpush3.msra.mxu1 %v4460_v47  ;;  %3366 = vmatprep.subr.mxu0 %v4877_v55 }
 0x276   :  { %3421 = vmatprep.subr.mxu1 %v4877_v55  ;;  %3367 = vmatpush3.msra.mxu0 %v4921_v53 }
 0x277   :  { %3422 = vmatpush3.msra.mxu1 %v4471_v60  ;;  %3423 = vmatprep.mubr.msk.f32.mxu1 %vm3441_vm1, %v4877_v55 }
 0x278   :  { %3368 = vmatprep.subr.mxu0 %v4877_v55  ;;  %3424 = vmatmul.mubr.f32.vlgmr.msra.gmra.mxu1 %v4506_v22 }
 0x279   :  { %3369 = vmatpush3.msra.mxu0 %v4922_v25  ;;  %3426 = vmatprep.mubr.msk.f32.mxu1 %vm3441_vm1, %v4877_v55 }
 0x27a   :  { %3370 = vmatprep.subr.mxu0 %v4877_v55  ;;  %3376 = vmatprep.mubr.msk.f32.mxu0 %vm3441_vm1, %v4877_v55 }
 0x27b   :  { %3371 = vmatpush3.msra.mxu0 %v4923_v35 }
 0x27c   :  { %3372 = vmatprep.subr.mxu0 %v4877_v55  ;;  %3427 = vmatmul.mubr.f32.gmra.mxu1 %v4517_v29 }
 0x27d   :  { %3373 = vmatpush3.msra.mxu0 %v4924_v28  ;;  %3429 = vmatprep.mubr.msk.f32.mxu1 %vm3441_vm1, %v4877_v55 }
 0x27e   :  { %3374 = vmatprep.subr.mxu0 %v4877_v55 }
 0x27f   :  { %3375 = vmatpush3.msra.mxu0 %v4925_v20 }
 0x280   :  { %3377 = vmatmul.mubr.f32.vlgmr.msra.gmra.mxu0 %v4506_v22  ;;  %3430 = vmatmul.mubr.f32.gmra.mxu1 %v4533_v15 }
 0x281   :  { %3379 = vmatprep.mubr.msk.f32.mxu0 %vm3441_vm1, %v4877_v55  ;;  %3432 = vmatprep.mubr.msk.f32.mxu1 %vm3441_vm1, %v4877_v55 }
 0x284   :  { %3380 = vmatmul.mubr.f32.gmra.mxu0 %v4517_v29  ;;  %3433 = vmatmul.mubr.f32.gmra.mxu1 %v4548_v48 }
 0x285   :  { %3382 = vmatprep.mubr.msk.f32.mxu0 %vm3441_vm1, %v4877_v55  ;;  %3435 = vmatprep.mubr.msk.f32.mxu1 %vm3441_vm1, %v4877_v55 }
 0x288   :  { %3383 = vmatmul.mubr.f32.gmra.mxu0 %v4533_v15  ;;  %3436 = vmatmul.mubr.f32.gmra.mxu1 %v4566_v62 }
 0x289   :  { %3385 = vmatprep.mubr.msk.f32.mxu0 %vm3441_vm1, %v4877_v55 }
 0x28c   :  { %3386 = vmatmul.mubr.f32.gmra.mxu0 %v4548_v48 }
 0x28d   :  { %3388 = vmatprep.mubr.msk.f32.mxu0 %vm3441_vm1, %v4877_v55 }
 0x290   :  { %3389 = vmatmul.mubr.f32.gmra.mxu0 %v4566_v62 }
 0x2e7   :  { %v1882_v5 = vpop.f32.mrf.mxu1 }
 0x2e9   :  { %v3237_v63 = vpop.f32.mrf.mxu1 }
 0x2eb   :  { %v1888_v16 = vpop.f32.mrf.mxu1 }
 0x2ed   :  { %v3240_v21 = vpop.f32.mrf.mxu1 }
 0x2ef   :  { %v1691_v33 = vpop.f32.mrf.mxu0 }
 0x2f0   :  { %v1692_v6 = vadd.f32 %v2429_v32, %v1691_v33  ;;  %v1894_v19 = vpop.f32.mrf.mxu1 }
 0x2f1   :  { %v3190_v58 = vpop.f32.mrf.mxu0 }
 0x2f2   :  { %v3243_v47 = vpop.f32.mrf.mxu1  ;;  %v1883_v60 = vadd.f32 %v1882_v5, %v1692_v6 }
 0x2f5   :  { %v1701_v22 = vpop.f32.mrf.mxu0 }
 0x2f6   :  { %v1702_v13 = vadd.f32 %v2429_v32, %v1701_v22  ;;  %v1900_v29 = vpop.f32.mrf.mxu1 }
 0x2f7   :  { %v3193_v55 = vpop.f32.mrf.mxu0 }
 0x2f8   :  { %v3246_v36 = vpop.f32.mrf.mxu1  ;;  %v1889_v40 = vadd.f32 %v1888_v16, %v1702_v13 }
 0x2fb   :  { %v1711_v23 = vpop.f32.mrf.mxu0 }
 0x2fc   :  { %v1712_v1 = vadd.f32 %v2429_v32, %v1711_v23  ;;  %v1906_v15 = vpop.f32.mrf.mxu1 }
 0x2fd   :  { %v3196_v44 = vpop.f32.mrf.mxu0 }
 0x2fe   :  { %v3249_v12 = vpop.f32.mrf.mxu1  ;;  %v1895_v9 = vadd.f32 %v1894_v19, %v1712_v1 }
 0x301   :  { %v1721_v7 = vpop.f32.mrf.mxu0 }
 0x302   :  { %v1722_v38 = vadd.f32 %v2429_v32, %v1721_v7 }
 0x303   :  { %v3199_v26 = vpop.f32.mrf.mxu0 }
 0x304   :  { %v1901_v27 = vadd.f32 %v1900_v29, %v1722_v38 }
 0x306   :  { %v1731_v49 = vpop.f32.mrf.mxu0 }
 0x307   :  { %v1732_v31 = vadd.f32 %v2429_v32, %v1731_v49 }
 0x308   :  { %v3202_v48 = vpop.f32.mrf.mxu0 }
 0x309   :  { %v1907_v18 = vadd.f32 %v1906_v15, %v1732_v31 }
 0x30e   :  { %v2127_v51 = vpop.f32.mrf.mxu1 }
 0x310   :  { %v3331_v0 = vpop.f32.mrf.mxu1 }
 0x313   :  { %v2135_v3 = vpop.f32.mrf.mxu1 }
 0x315   :  { %v3334_v4 = vpop.f32.mrf.mxu1 }
 0x318   :  { %v2010_v62 = vpop.f32.mrf.mxu0 }
 0x319   :  { %v2143_v11 = vpop.f32.mrf.mxu1  ;;  %v2011_v14 = vadd.f32 %v2010_v62, %v1883_v60 }
 0x31a   :  { %v3284_v39 = vpop.f32.mrf.mxu0 }
 0x31b   :  { %v3337_v61 = vpop.f32.mrf.mxu1  ;;  %v2128_v37 = vadd.f32 %v2127_v51, %v2011_v14 }
 0x31e   :  { %v2017_v2 = vpop.f32.mrf.mxu0 }
 0x31f   :  { %v2151_v45 = vpop.f32.mrf.mxu1  ;;  %v2018_v54 = vadd.f32 %v2017_v2, %v1889_v40 }
 0x320   :  { %v3287_v24 = vpop.f32.mrf.mxu0 }
 0x321   :  { %v3340_v8 = vpop.f32.mrf.mxu1  ;;  %v2136_v63 = vadd.f32 %v2135_v3, %v2018_v54 }
 0x324   :  { %v2024_v17 = vpop.f32.mrf.mxu0 }
 0x325   :  { %v2159_v34 = vpop.f32.mrf.mxu1  ;;  %v2025_v20 = vadd.f32 %v2024_v17, %v1895_v9 }
 0x326   :  { %v3290_v59 = vpop.f32.mrf.mxu0 }
 0x327   :  { %v3343_v10 = vpop.f32.mrf.mxu1  ;;  %v2144_v47 = vadd.f32 %v2143_v11, %v2025_v20 }
 0x32a   :  { %v2031_v46 = vpop.f32.mrf.mxu0 }
 0x32b   :  { %v2032_v19 = vadd.f32 %v2031_v46, %v1901_v27 }
 0x32c   :  { %v3293_v57 = vpop.f32.mrf.mxu0 }
 0x32d   :  { %v2152_v23 = vadd.f32 %v2151_v45, %v2032_v19 }
 0x32f   :  { %v2038_v56 = vpop.f32.mrf.mxu0 }
 0x330   :  { %v2039_v36 = vadd.f32 %v2038_v56, %v1907_v18 }
 0x331   :  { %v3296_v52 = vpop.f32.mrf.mxu0 }
 0x332   :  { %v2160_v9 = vadd.f32 %v2159_v34, %v2039_v36 }
 0x338   :  { %v2389_v43 = vpop.f32.mrf.mxu1 }
 0x33a   :  { %v3425_v41 = vpop.f32.mrf.mxu1 }
 0x33c   :  { %v2395_v50 = vpop.f32.mrf.mxu1 }
 0x33e   :  { %v3428_v30 = vpop.f32.mrf.mxu1 }
 0x340   :  { %v2278_v42 = vpop.f32.mrf.mxu0  ;;  %v2401_v53 = vpop.f32.mrf.mxu1 }
 0x341   :  { %v2279_v25 = vadd.f32 %v2278_v42, %v2128_v37 }
 0x342   :  { %v3378_v35 = vpop.f32.mrf.mxu0  ;;  %v3431_v28 = vpop.f32.mrf.mxu1 }
 0x343   :  { %v2390_v5 = vadd.f32 %v2389_v43, %v2279_v25 }
 0x344   :  { %v2284_v16 = vpop.f32.mrf.mxu0  ;;  %v2407_v21 = vpop.f32.mrf.mxu1 }
 0x345   :  { %2418 = vst.msk [vmem:[%s4810_s7] sm:$0xff] %vm2417_vm12, %v2390_v5  ;;  %v2285_v32 = vadd.f32 %v2284_v16, %v2136_v63 }
 0x346   :  { %v3381_v33 = vpop.f32.mrf.mxu0  ;;  %v3434_v6 = vpop.f32.mrf.mxu1 }
 0x347   :  { %v2396_v58 = vadd.f32 %v2395_v50, %v2285_v32 }
 0x348   :  { %v2290_v60 = vpop.f32.mrf.mxu0  ;;  %v2413_v22 = vpop.f32.mrf.mxu1 }
 0x349   :  { %2419 = vst.msk [vmem:[%s4810_s7 + $0x8] sm:$0xff] %vm2417_vm12, %v2396_v58  ;;  %v2291_v13 = vadd.f32 %v2290_v60, %v2144_v47 }
 0x34a   :  { %v3384_v29 = vpop.f32.mrf.mxu0  ;;  %v3437_v55 = vpop.f32.mrf.mxu1 }
 0x34b   :  { %v2402_v40 = vadd.f32 %v2401_v53, %v2291_v13 }
 0x34c   :  { %v2296_v1 = vpop.f32.mrf.mxu0 }
 0x34d   :  { %2420 = vst.msk [vmem:[%s4810_s7 + $0x10] sm:$0xff] %vm2417_vm12, %v2402_v40  ;;  %v2297_v15 = vadd.f32 %v2296_v1, %v2152_v23 }
 0x34e   :  { %v3387_v44 = vpop.f32.mrf.mxu0 }
 0x34f   :  { %v2408_v12 = vadd.f32 %v2407_v21, %v2297_v15 }
 0x350   :  { %v2302_v7 = vpop.f32.mrf.mxu0 }
 0x351   :  { %2421 = vst.msk [vmem:[%s4810_s7 + $0x18] sm:$0xff] %vm2417_vm12, %v2408_v12  ;;  %v2303_v38 = vadd.f32 %v2302_v7, %v2160_v9 }
 0x352   :  { %v3390_v26 = vpop.f32.mrf.mxu0 }
 0x353   :  { %v2414_v27 = vadd.f32 %v2413_v22, %v2303_v38 }
 0x355   :  { %2422 = vst.msk [vmem:[%s4810_s7 + $0x20] sm:$0xff] %vm2417_vm12, %v2414_v27 }

</bundles_post_ra>
